<compile_context>
chip_gen: v6e
topology: v6e:2x2x1
jax: 0.10.0
libtpu: 0.0.40
codegen_flags: <defaults>
</compile_context>

<pallas_src>
import functools

import jax
import jax.numpy as jnp
from jax.experimental import pallas as pl
from jax.experimental.pallas import tpu as pltpu

HIDDEN = 128          # fixed by the module: nn.Linear(context*embed_dim, 128)
BATCH_TILE = 128      # MXU-filling batch tile per grid step
LANE = 128            # TPU lane width (vocab / ids padding granularity)
NEG_LARGE = -1e30     # pre-baked mask value for padded vocab columns (in b2)


def _round_up(x, m):
    return (x + m - 1) // m * m


def _w2v_kernel(ids_ref, t_ref, b1_ref, w2_ref, b2_ref, out_ref, *, context_size):
    """One batch tile: multi-hot gather+linear1 -> relu -> linear2 -> log_softmax."""
    bt = out_ref.shape[0]
    k = t_ref.shape[0]                      # context * v_gather_pad

    # ---- fused embedding gather + linear1 (single MXU matmul) -------------
    # onehot[b, c*Vg + v] = (flat_ids[b, c] == c*Vg + v); x @ W1 == onehot @ T.
    col = jax.lax.broadcasted_iota(jnp.int32, (bt, k), 1)
    ids = ids_ref[...]                      # (BATCH_TILE, LANE) int32, cols >= ctx unused
    onehot = jnp.zeros((bt, k), jnp.float32)
    for c in range(context_size):           # context is tiny (e.g. 4): static unroll
        onehot = onehot + (col == ids[:, c:c + 1]).astype(jnp.float32)

    h = jnp.dot(onehot, t_ref[...], preferred_element_type=jnp.float32) + b1_ref[...]
    h = jnp.maximum(h, 0.0)                 # ReLU

    # ---- linear2 + log_softmax (vocab mask pre-baked into b2) -------------
    logits = jnp.dot(h, w2_ref[...], preferred_element_type=jnp.float32) + b2_ref[...]
    m = jnp.max(logits, axis=-1, keepdims=True)
    shifted = logits - m
    lse = jnp.log(jnp.sum(jnp.exp(shifted), axis=-1, keepdims=True))
    out_ref[...] = shifted - lse


def w2v_forward_batch(ids, emb_table, w1, b1, w2, b2, *, batch_tile=BATCH_TILE):
    """Batched forward: ids (B, context) int32 -> (B, vocab) log-probs."""
    batch, context_size = ids.shape
    vocab_size, embed_dim = emb_table.shape
    k_in = context_size * embed_dim
    assert w1.shape == (k_in, HIDDEN) and w2.shape == (HIDDEN, vocab_size)

    v_g = _round_up(vocab_size, LANE)        # per-context-slot gather padding
    k_g = context_size * v_g                 # fused-table rows (lane multiple)
    v_pad = _round_up(vocab_size, LANE)      # output vocab padding (lane-dense)
    b_pad = _round_up(max(batch, 1), batch_tile)

    # Fused gather+linear1 table: T[c*Vg + v, :] = emb[v] @ W1[c*D:(c+1)*D, :].
    w1_r = w1.reshape(context_size, embed_dim, HIDDEN)
    t_c = jnp.einsum('vd,cdh->cvh', emb_table, w1_r)          # (C, vocab, HIDDEN)
    t = jnp.zeros((context_size, v_g, HIDDEN), jnp.float32)
    t = t.at[:, :vocab_size, :].set(t_c).reshape(k_g, HIDDEN)

    # Flat multi-hot targets; minor dim padded to a full lane group for layout.
    offsets = (jnp.arange(context_size, dtype=jnp.int32) * v_g)[None, :]
    flat_ids = ids.astype(jnp.int32) + offsets                 # (B, context)
    ids_p = jnp.zeros((b_pad, LANE), jnp.int32).at[:batch, :context_size].set(flat_ids)

    # Weights: W2 zero-padded; b2 padded with NEG_LARGE (pre-baked vocab mask).
    w2_p = jnp.zeros((HIDDEN, v_pad), jnp.float32).at[:, :vocab_size].set(w2)
    b2_p = jnp.full((1, v_pad), NEG_LARGE, jnp.float32).at[0, :vocab_size].set(b2)
    b1_p = b1.reshape(1, HIDDEN).astype(jnp.float32)

    n_tiles = b_pad // batch_tile
    kernel = functools.partial(_w2v_kernel, context_size=context_size)

    flops = 2 * b_pad * (k_g * HIDDEN + HIDDEN * v_pad)
    bytes_accessed = 4 * (ids_p.size + t.size + HIDDEN + HIDDEN * v_pad
                          + v_pad + b_pad * v_pad)

    out = pl.pallas_call(
        kernel,
        out_shape=jax.ShapeDtypeStruct((b_pad, v_pad), jnp.float32),
        grid_spec=pltpu.PrefetchScalarGridSpec(
            num_scalar_prefetch=0,
            grid=(n_tiles,),
            in_specs=[
                pl.BlockSpec((batch_tile, LANE), lambda i: (i, 0)),   # flat ids
                pl.BlockSpec((k_g, HIDDEN), lambda i: (0, 0)),        # fused table T
                pl.BlockSpec((1, HIDDEN), lambda i: (0, 0)),          # b1
                pl.BlockSpec((HIDDEN, v_pad), lambda i: (0, 0)),      # W2
                pl.BlockSpec((1, v_pad), lambda i: (0, 0)),           # b2 (masked)
            ],
            out_specs=pl.BlockSpec((batch_tile, v_pad), lambda i: (i, 0)),
        ),
        compiler_params=pltpu.CompilerParams(
            dimension_semantics=("parallel",),    # batch tiles independent (megacore)
        ),
        cost_estimate=pl.CostEstimate(
            flops=flops,
            transcendentals=b_pad * (v_pad + 1),
            bytes_accessed=bytes_accessed,
        ),
    )(ids_p, t, b1_p, w2_p, b2_p)

    return out[:batch, :vocab_size]


def w2v_forward(inputs, emb_table, w1, b1, w2, b2):
    """Module-faithful forward: inputs (context_size,) int32 -> (1, vocab)."""
    return w2v_forward_batch(inputs[None, :], emb_table, w1, b1, w2, b2)


def reference_forward_batch(ids, emb_table, w1, b1, w2, b2):
    x = jnp.take(emb_table, ids, axis=0).reshape(ids.shape[0], -1)
    h = jnp.maximum(x @ w1 + b1, 0.0)
    logits = h @ w2 + b2
    return jax.nn.log_softmax(logits, axis=-1)


if __name__ == "__main__":
    # Small, W2v-consistent shapes.
    vocab_size = 64
    embedding_dim = 16
    context_size = 4

    key = jax.random.PRNGKey(0)
    k_emb, k_w1, k_b1, k_w2, k_b2, k_in, k_bat = jax.random.split(key, 7)

    emb_table = jax.random.normal(k_emb, (vocab_size, embedding_dim), dtype=jnp.float32)
    w1 = jax.random.uniform(k_w1, (context_size * embedding_dim, HIDDEN),
                            minval=-0.1, maxval=0.1, dtype=jnp.float32)
    b1 = jax.random.uniform(k_b1, (HIDDEN,), minval=-0.1, maxval=0.1, dtype=jnp.float32)
    w2 = jax.random.uniform(k_w2, (HIDDEN, vocab_size),
                            minval=-0.1, maxval=0.1, dtype=jnp.float32)
    b2 = jax.random.uniform(k_b2, (vocab_size,), minval=-0.1, maxval=0.1, dtype=jnp.float32)

    # 1) Module-faithful single context window -> (1, vocab) log-probs.
    inputs = jax.random.randint(k_in, (context_size,), 0, vocab_size, dtype=jnp.int32)
    log_probs = w2v_forward(inputs, emb_table, w1, b1, w2, b2)
    jax.block_until_ready(log_probs)
    ref = reference_forward_batch(inputs[None, :], emb_table, w1, b1, w2, b2)
    assert log_probs.shape == (1, vocab_size)
    assert jnp.allclose(log_probs, ref, atol=1e-4, rtol=1e-4)
    assert jnp.allclose(jnp.sum(jnp.exp(log_probs)), 1.0, atol=1e-5)

    # 2) Batched path: batch=200 -> 2 batch tiles (exercises the grid and, on
    #    v7x, gives both TensorCores a "parallel" step), plus batch-tile padding.
    batch = 200
    ids = jax.random.randint(k_bat, (batch, context_size), 0, vocab_size, dtype=jnp.int32)
    lp_b = w2v_forward_batch(ids, emb_table, w1, b1, w2, b2)
    jax.block_until_ready(lp_b)
    ref_b = reference_forward_batch(ids, emb_table, w1, b1, w2, b2)
    assert lp_b.shape == (batch, vocab_size)
    assert jnp.allclose(lp_b, ref_b, atol=1e-4, rtol=1e-4)
    assert jnp.allclose(jnp.sum(jnp.exp(lp_b), axis=-1),
                        jnp.ones((batch,)), atol=1e-5)

    print("KERNEL_OK")
</pallas_src>

<mosaic_0001>
module attributes {stable_mosaic.version = 11 : i64} {
  func.func @_w2v_kernel(%arg0: i32, %arg1: memref<128x128xi32, #tpu.memory_space<vmem>>, %arg2: memref<512x128xf32, #tpu.memory_space<vmem>>, %arg3: memref<1x128xf32, #tpu.memory_space<vmem>>, %arg4: memref<128x128xf32, #tpu.memory_space<vmem>>, %arg5: memref<1x128xf32, #tpu.memory_space<vmem>>, %arg6: memref<128x128xf32, #tpu.memory_space<vmem>>) attributes {dimension_semantics = [#tpu.dimension_semantics<parallel>], iteration_bounds = array<i64: 1>, scalar_prefetch = 0 : i64, scratch_operands = 0 : i64, tpu.core_type = #tpu.core_type<tc>, window_params = [{transform_indices = @transform_0, window_bounds = array<i64: 128, 128>}, {pipeline_mode = #tpu.pipeline_mode<synchronous>, transform_indices = @transform_1, window_bounds = array<i64: 512, 128>}, {pipeline_mode = #tpu.pipeline_mode<synchronous>, transform_indices = @transform_2, window_bounds = array<i64: 1, 128>}, {pipeline_mode = #tpu.pipeline_mode<synchronous>, transform_indices = @transform_3, window_bounds = array<i64: 128, 128>}, {pipeline_mode = #tpu.pipeline_mode<synchronous>, transform_indices = @transform_4, window_bounds = array<i64: 1, 128>}, {transform_indices = @transform_5, window_bounds = array<i64: 128, 128>}]} {
    %0 = tpu.iota {dimensions = array<i32: 1>} : vector<128x512xi32>
    %c0 = arith.constant 0 : index
    %c0_0 = arith.constant 0 : index
    %1 = vector.load %arg1[%c0, %c0_0] : memref<128x128xi32, #tpu.memory_space<vmem>>, vector<128x128xi32>
    %cst = arith.constant 0.000000e+00 : f32
    %2 = vector.broadcast %cst : f32 to vector<128x512xf32>
    %3 = vector.extract_strided_slice %1 {offsets = [0, 0], sizes = [128, 1], strides = [1, 1]} : vector<128x128xi32> to vector<128x1xi32>
    %4 = vector.broadcast %3 : vector<128x1xi32> to vector<128x512xi32>
    %5 = arith.cmpi eq, %0, %4 : vector<128x512xi32>
    %6 = arith.extui %5 : vector<128x512xi1> to vector<128x512xi32>
    %7 = arith.sitofp %6 : vector<128x512xi32> to vector<128x512xf32>
    %8 = arith.addf %2, %7 : vector<128x512xf32>
    %9 = vector.extract_strided_slice %1 {offsets = [0, 1], sizes = [128, 1], strides = [1, 1]} : vector<128x128xi32> to vector<128x1xi32>
    %10 = vector.broadcast %9 : vector<128x1xi32> to vector<128x512xi32>
    %11 = arith.cmpi eq, %0, %10 : vector<128x512xi32>
    %12 = arith.extui %11 : vector<128x512xi1> to vector<128x512xi32>
    %13 = arith.sitofp %12 : vector<128x512xi32> to vector<128x512xf32>
    %14 = arith.addf %8, %13 : vector<128x512xf32>
    %15 = vector.extract_strided_slice %1 {offsets = [0, 2], sizes = [128, 1], strides = [1, 1]} : vector<128x128xi32> to vector<128x1xi32>
    %16 = vector.broadcast %15 : vector<128x1xi32> to vector<128x512xi32>
    %17 = arith.cmpi eq, %0, %16 : vector<128x512xi32>
    %18 = arith.extui %17 : vector<128x512xi1> to vector<128x512xi32>
    %19 = arith.sitofp %18 : vector<128x512xi32> to vector<128x512xf32>
    %20 = arith.addf %14, %19 : vector<128x512xf32>
    %21 = vector.extract_strided_slice %1 {offsets = [0, 3], sizes = [128, 1], strides = [1, 1]} : vector<128x128xi32> to vector<128x1xi32>
    %22 = vector.broadcast %21 : vector<128x1xi32> to vector<128x512xi32>
    %23 = arith.cmpi eq, %0, %22 : vector<128x512xi32>
    %24 = arith.extui %23 : vector<128x512xi1> to vector<128x512xi32>
    %25 = arith.sitofp %24 : vector<128x512xi32> to vector<128x512xf32>
    %26 = arith.addf %20, %25 : vector<128x512xf32>
    %c0_1 = arith.constant 0 : index
    %c0_2 = arith.constant 0 : index
    %27 = vector.load %arg2[%c0_1, %c0_2] : memref<512x128xf32, #tpu.memory_space<vmem>>, vector<512x128xf32>
    %cst_3 = arith.constant dense<0.000000e+00> : vector<128x128xf32>
    %28 = tpu.matmul %26, %27, %cst_3 {dimension_numbers = #tpu.dot_dimension_numbers<[1], [0], [0], [1], [0, 0, 1, 1], [], []>} : vector<128x512xf32>, vector<512x128xf32>, vector<128x128xf32> -> vector<128x128xf32>
    %c0_4 = arith.constant 0 : index
    %c0_5 = arith.constant 0 : index
    %29 = vector.load %arg3[%c0_4, %c0_5] : memref<1x128xf32, #tpu.memory_space<vmem>>, vector<1x128xf32>
    %30 = vector.broadcast %29 : vector<1x128xf32> to vector<128x128xf32>
    %31 = arith.addf %28, %30 : vector<128x128xf32>
    %cst_6 = arith.constant 0.000000e+00 : f32
    %32 = vector.broadcast %cst_6 : f32 to vector<128x128xf32>
    %33 = arith.maximumf %31, %32 : vector<128x128xf32>
    %c0_7 = arith.constant 0 : index
    %c0_8 = arith.constant 0 : index
    %34 = vector.load %arg4[%c0_7, %c0_8] : memref<128x128xf32, #tpu.memory_space<vmem>>, vector<128x128xf32>
    %cst_9 = arith.constant dense<0.000000e+00> : vector<128x128xf32>
    %35 = tpu.matmul %33, %34, %cst_9 {dimension_numbers = #tpu.dot_dimension_numbers<[1], [0], [0], [1], [0, 0, 1, 1], [], []>} : vector<128x128xf32>, vector<128x128xf32>, vector<128x128xf32> -> vector<128x128xf32>
    %c0_10 = arith.constant 0 : index
    %c0_11 = arith.constant 0 : index
    %36 = vector.load %arg5[%c0_10, %c0_11] : memref<1x128xf32, #tpu.memory_space<vmem>>, vector<1x128xf32>
    %37 = vector.broadcast %36 : vector<1x128xf32> to vector<128x128xf32>
    %38 = arith.addf %35, %37 : vector<128x128xf32>
    %cst_12 = arith.constant dense<0xFF800000> : vector<128xf32>
    %39 = vector.multi_reduction <maximumf>, %38, %cst_12 [1] : vector<128x128xf32> to vector<128xf32>
    %40 = vector.shape_cast %39 : vector<128xf32> to vector<128x1xf32>
    %41 = vector.broadcast %40 : vector<128x1xf32> to vector<128x128xf32>
    %42 = arith.subf %38, %41 : vector<128x128xf32>
    %43 = math.exp %42 : vector<128x128xf32>
    %cst_13 = arith.constant dense<0.000000e+00> : vector<128xf32>
    %44 = vector.multi_reduction <add>, %43, %cst_13 [1] : vector<128x128xf32> to vector<128xf32>
    %45 = vector.shape_cast %44 : vector<128xf32> to vector<128x1xf32>
    %46 = math.log %45 : vector<128x1xf32>
    %47 = vector.broadcast %46 : vector<128x1xf32> to vector<128x128xf32>
    %48 = arith.subf %42, %47 : vector<128x128xf32>
    %c0_14 = arith.constant 0 : index
    %c0_15 = arith.constant 0 : index
    %49 = vector.load %arg6[%c0_14, %c0_15] : memref<128x128xf32, #tpu.memory_space<vmem>>, vector<128x128xf32>
    tpu.vector_store %arg6[%c0_14, %c0_15], %48 {strides = array<i32>} : memref<128x128xf32, #tpu.memory_space<vmem>>, vector<128x128xf32>,
    return
  }
  func.func @transform_0(%arg0: i32) -> (i32, i32) {
    %c0_i32 = arith.constant 0 : i32
    %c0_i32_0 = arith.constant 0 : i32
    return %arg0, %c0_i32 : i32, i32
  }
  func.func @transform_1(%arg0: i32) -> (i32, i32) {
    %c0_i32 = arith.constant 0 : i32
    %c0_i32_0 = arith.constant 0 : i32
    %c0_i32_1 = arith.constant 0 : i32
    return %c0_i32, %c0_i32_0 : i32, i32
  }
  func.func @transform_2(%arg0: i32) -> (i32, i32) {
    %c0_i32 = arith.constant 0 : i32
    %c0_i32_0 = arith.constant 0 : i32
    %c0_i32_1 = arith.constant 0 : i32
    return %c0_i32, %c0_i32_0 : i32, i32
  }
  func.func @transform_3(%arg0: i32) -> (i32, i32) {
    %c0_i32 = arith.constant 0 : i32
    %c0_i32_0 = arith.constant 0 : i32
    %c0_i32_1 = arith.constant 0 : i32
    return %c0_i32, %c0_i32_0 : i32, i32
  }
  func.func @transform_4(%arg0: i32) -> (i32, i32) {
    %c0_i32 = arith.constant 0 : i32
    %c0_i32_0 = arith.constant 0 : i32
    %c0_i32_1 = arith.constant 0 : i32
    return %c0_i32, %c0_i32_0 : i32, i32
  }
  func.func @transform_5(%arg0: i32) -> (i32, i32) {
    %c0_i32 = arith.constant 0 : i32
    %c0_i32_0 = arith.constant 0 : i32
    return %arg0, %c0_i32 : i32, i32
  }
}

</mosaic_0001>

<bundles_post_ra>
// kernel: tpu_custom_call.1
= control target key start
LH: loop header
LB: loop body
LE: loop exit
PB: predicated region body
PF: predicated region fallthrough
CT: control target
= control target key end

     0   :  { %10 = vsyncpa [#allocation3], 0  ;;  %s4335_s0 = inlined_call_operand.hbm [shape: s32[128,128], index: 0, kind: input, shape index: {}]   ;;  %s4336_s1 = inlined_call_operand.hbm [shape: f32[512,128], index: 1, kind: input, shape index: {}]   ;;  %s4337_s2 = inlined_call_operand.vmem [shape: f32[1,128], index: 2, kind: input, shape index: {}]   ;;  %s4338_s3 = inlined_call_operand.hbm [shape: f32[128,128], index: 3, kind: input, shape index: {}]   ;;  %s4339_s4 = inlined_call_operand.vmem [shape: f32[1,128], index: 4, kind: input, shape index: {}]   ;;  %s4340_s5 = inlined_call_operand.hbm [shape: f32[128,128], index: 5, kind: output, shape index: {}]  }
   0x1   :  { %11 = vsyncpa [#allocation6], 0 }
   0x2   :  { %12 = vsyncpa [#allocation4], 0  ;;  %s2787_s18 = smov [#allocation5]   ;;  %s2788_s20 = smov [#allocation2]  }
   0x3   :  { %s30_s19 = sshll.u32 %s2787_s18, 4  ;;  %s18_s21 = sshll.u32 %s2788_s20, 4  ;;  %s31_s19 = int_to_ptr.vmem [resolvable:$true] %s30_s19  ;;  %s19_s21 = int_to_ptr.vmem [resolvable:$true] %s18_s21 }
   0x4   :  { %s2709_s22 = scalar_lea.vmem %s31_s19, 8192  ;;  %p2714_p1 = scmp.lt.s32.totalorder %s31_s19, %s31_s19 }
   0x5   :  { %p2710_p0 = scmp.ne.s32.totalorder %s31_s19, %s2709_s22  ;;  %p2715_p2 = scmp.lt.s32.totalorder %s2709_s22, %s2709_s22 }
   0x7   :  { %p2716_p3 = por %p2715_p2, %p2714_p1 }
   0x9   :  { %p2717_p4 = pnand %p2716_p3, %p2710_p0 }
   0xb   :  { %2720 = shalt.err (!%p2717_p4)
}
   0xc   :  { %s2789_s23 = smov 128   ;;  %s2790_s24 = smov 8  }
   0xd   :  { %36 = dma.hbm_to_vmem [thread:$0]  %s4336_s1, 8192, %s31_s19, [#allocation6], %s2789_s23, %s2789_s23, %s2790_s24  }
   0xe   :  { %s2729_s27 = scalar_lea.vmem %s19_s21, 2048  ;;  %p2734_p6 = scmp.lt.s32.totalorder %s19_s21, %s19_s21 }
   0xf   :  { %p2730_p5 = scmp.ne.s32.totalorder %s19_s21, %s2729_s27  ;;  %p2735_p7 = scmp.lt.s32.totalorder %s2729_s27, %s2729_s27 }
  0x11   :  { %p2736_p8 = por %p2735_p7, %p2734_p6 }
  0x13   :  { %p2737_p9 = pnand %p2736_p8, %p2730_p5 }
  0x15   :  { %2740 = shalt.err (!%p2737_p9)
}
  0x16   :  { %24 = dma.hbm_to_vmem [thread:$0]  %s4335_s0, 2048, %s19_s21, [#allocation3], %s2789_s23, %s2789_s23, %s2790_s24  }
  0x17   :  { %s2791_s30 = smov [#allocation7]  }
  0x18   :  { %s44_s6 = sshll.u32 %s2791_s30, 4  ;;  %s45_s6 = int_to_ptr.vmem [resolvable:$true] %s44_s6 }
  0x19   :  { %s2749_s7 = scalar_lea.vmem %s45_s6, 2048  ;;  %p2754_p11 = scmp.lt.s32.totalorder %s45_s6, %s45_s6 }
  0x1a   :  { %p2750_p10 = scmp.ne.s32.totalorder %s45_s6, %s2749_s7  ;;  %p2755_p12 = scmp.lt.s32.totalorder %s2749_s7, %s2749_s7 }
  0x1c   :  { %p2756_p13 = por %p2755_p12, %p2754_p11 }
  0x1e   :  { %p2757_p0 = pnand %p2756_p13, %p2750_p10 }
  0x20   :  { %2760 = shalt.err (!%p2757_p0)
}
  0x21   :  { %50 = dma.hbm_to_vmem [thread:$0]  %s4338_s3, 2048, %s45_s6, [#allocation6], %s2789_s23, %s2789_s23, %s2790_s24  }
  0x22   :  { %2781 = dma.done.wait [#allocation3], 2048  }
  0x23   :  { %2782 = vsyncadd [#allocation3], 4294965248 }
  0x24   :  { %2783 = dma.done.wait [#allocation6], 10240  }
  0x25   :  { %2784 = vsyncadd [#allocation6], 4294957056  ;;  %v2792_v0 = vmov 3   ;;  %v2793_v1 = vmov 2   ;;  %v2848_v2 = vld [vmem:[#allocation2] sm:$0xff]  ;;  %v2852_v3 = vld [vmem:[#allocation2 + $0x18] sm:$0xff] }
  0x26   :  { %2590 = vset.pattern.permute.xlu0 %v2792_v0  ;;  %2587 = vset.pattern.permute.xlu1 %v2793_v1  ;;  %v2854_v4 = vld [vmem:[#allocation2 + $0x8] sm:$0xff]  ;;  %v1330_v5 = vld [vmem:[#allocation5 + $0xf8] sm:$0xff]  ;;  %v2794_v8 = vmov 0   ;;  %v1329_v10 = vld [vmem:[#allocation5 + $0xf0] sm:$0xff]  ;;  %v2795_v13 = vmov 1  }
  0x27   :  { %996 = vperm.xlu0 %2590, %v2848_v2   ;;  %692 = vperm.xlu1 %2587, %v2848_v2   ;;  %v1362_v6 = vld [vmem:[#allocation5 + $0x1f8] sm:$0xff]  ;;  %v1361_v11 = vld [vmem:[#allocation5 + $0x1f0] sm:$0xff]  ;;  %v1328_v15 = vld [vmem:[#allocation5 + $0xe8] sm:$0xff] }
  0x28   :  { %v1314_v7 = vld [vmem:[#allocation5 + $0x78] sm:$0xff]  ;;  %2296 = vmatprep.subr.mxu0 %v1330_v5  ;;  %2376 = vmatprep.subr.mxu1 %v1362_v6  ;;  %v1313_v12 = vld [vmem:[#allocation5 + $0x70] sm:$0xff]  ;;  %v1360_v16 = vld [vmem:[#allocation5 + $0x1e8] sm:$0xff] }
  0x29   :  { %v1346_v9 = vld [vmem:[#allocation5 + $0x178] sm:$0xff]  ;;  %2297 = vmatpush3.msra.mxu0 %v1314_v7  ;;  %v1345_v14 = vld [vmem:[#allocation5 + $0x170] sm:$0xff]  ;;  %v1312_v17 = vld [vmem:[#allocation5 + $0x68] sm:$0xff] }
  0x2a   :  { %2377 = vmatpush3.msra.mxu1 %v1346_v9  ;;  %2298 = vmatprep.subr.mxu0 %v1329_v10  ;;  %v2863_v18 = vld [vmem:[#allocation2 + $0x10] sm:$0xff]  ;;  %v1344_v19 = vld [vmem:[#allocation5 + $0x168] sm:$0xff]  ;;  %v1327_v20 = vld [vmem:[#allocation5 + $0xe0] sm:$0xff] }
  0x2b   :  { %1005 = vperm.xlu0 %2590, %v2852_v3   ;;  %2588 = vset.pattern.permute.xlu1 %v2794_v8  ;;  %v1359_v21 = vld [vmem:[#allocation5 + $0x1e0] sm:$0xff]  ;;  %v2867_v24 = vld [vmem:[#allocation2 + $0x28] sm:$0xff]  ;;  %v1326_v25 = vld [vmem:[#allocation5 + $0xd8] sm:$0xff] }
  0x2c   :  { %87 = vperm.xlu1 %2588, %v2854_v4   ;;  %2378 = vmatprep.subr.mxu1 %v1361_v11  ;;  %v1311_v22 = vld [vmem:[#allocation5 + $0x60] sm:$0xff]  ;;  %v1358_v26 = vld [vmem:[#allocation5 + $0x1d8] sm:$0xff]  ;;  %v1325_v29 = vld [vmem:[#allocation5 + $0xd0] sm:$0xff] }
  0x2d   :  { %2299 = vmatpush3.msra.mxu0 %v1313_v12  ;;  %2379 = vmatpush3.msra.mxu1 %v1345_v14  ;;  %v1343_v23 = vld [vmem:[#allocation5 + $0x160] sm:$0xff]  ;;  %v1310_v27 = vld [vmem:[#allocation5 + $0x58] sm:$0xff]  ;;  %v1357_v31 = vld [vmem:[#allocation5 + $0x1d0] sm:$0xff] }
  0x2e   :  { %2300 = vmatprep.subr.mxu0 %v1328_v15  ;;  %2380 = vmatprep.subr.mxu1 %v1360_v16  ;;  %v1342_v28 = vld [vmem:[#allocation5 + $0x158] sm:$0xff]  ;;  %v2871_v30 = vld [vmem:[#allocation2 + $0x40] sm:$0xff]  ;;  %v1309_v32 = vld [vmem:[#allocation5 + $0x50] sm:$0xff] }
  0x2f   :  { %2599 = vset.pattern.permute.xlu0 %v2795_v13  ;;  %2301 = vmatpush3.msra.mxu0 %v1312_v17  ;;  %v1341_v33 = vld [vmem:[#allocation5 + $0x150] sm:$0xff]  ;;  %v1324_v34 = vld [vmem:[#allocation5 + $0xc8] sm:$0xff]  ;;  %v1323_v38 = vld [vmem:[#allocation5 + $0xc0] sm:$0xff] }
  0x30   :  { %388 = vperm.xlu0 %2599, %v2848_v2   ;;  %2589 = vset.pattern.permute.xlu1 %v2795_v13  ;;  %v1356_v35 = vld [vmem:[#allocation5 + $0x1c8] sm:$0xff]  ;;  %v1355_v39 = vld [vmem:[#allocation5 + $0x1c0] sm:$0xff]  ;;  %v1322_v42 = vld [vmem:[#allocation5 + $0xb8] sm:$0xff] }
  0x31   :  { %391 = vperm.xlu1 %2589, %v2854_v4   ;;  %2381 = vmatpush3.msra.mxu1 %v1344_v19  ;;  %v1308_v36 = vld [vmem:[#allocation5 + $0x48] sm:$0xff]  ;;  %v1307_v40 = vld [vmem:[#allocation5 + $0x40] sm:$0xff]  ;;  %v1354_v43 = vld [vmem:[#allocation5 + $0x1b8] sm:$0xff] }
  0x32   :  { %2302 = vmatprep.subr.mxu0 %v1327_v20  ;;  %2382 = vmatprep.subr.mxu1 %v1359_v21  ;;  %v1340_v37 = vld [vmem:[#allocation5 + $0x148] sm:$0xff]  ;;  %v1339_v41 = vld [vmem:[#allocation5 + $0x140] sm:$0xff]  ;;  %v1306_v44 = vld [vmem:[#allocation5 + $0x38] sm:$0xff] }
  0x33   :  { %2303 = vmatpush3.msra.mxu0 %v1311_v22  ;;  %2383 = vmatpush3.msra.mxu1 %v1343_v23  ;;  %v1338_v45 = vld [vmem:[#allocation5 + $0x138] sm:$0xff]  ;;  %v1321_v46 = vld [vmem:[#allocation5 + $0xb0] sm:$0xff]  ;;  %v1320_v51 = vld [vmem:[#allocation5 + $0xa8] sm:$0xff] }
  0x34   :  { %394 = vperm.xlu0 %2599, %v2863_v18   ;;  %2304 = vmatprep.subr.mxu0 %v1326_v25  ;;  %v1353_v47 = vld [vmem:[#allocation5 + $0x1b0] sm:$0xff]  ;;  %v1352_v52 = vld [vmem:[#allocation5 + $0x1a8] sm:$0xff]  ;;  %v1319_v56 = vld [vmem:[#allocation5 + $0xa0] sm:$0xff]  ;;  %v62_v25 = vlaneseq }
  0x35   :  { %2591 = vset.pattern.permute.xlu1 %v2793_v1  ;;  %2384 = vmatprep.subr.mxu1 %v1358_v26  ;;  %v1305_v48 = vld [vmem:[#allocation5 + $0x30] sm:$0xff]  ;;  %v1304_v53 = vld [vmem:[#allocation5 + $0x28] sm:$0xff]  ;;  %v1351_v57 = vld [vmem:[#allocation5 + $0x1a0] sm:$0xff] }
  0x36   :  { %695 = vperm.xlu1 %2591, %v2854_v4   ;;  %2305 = vmatpush3.msra.mxu0 %v1310_v27  ;;  %v2883_v49 = vld [vmem:[#allocation2 + $0x30] sm:$0xff]  ;;  %v1336_v54 = vld [vmem:[#allocation5 + $0x128] sm:$0xff]  ;;  %v1303_v58 = vld [vmem:[#allocation5 + $0x20] sm:$0xff]  ;;  %v2944_v27 = vand.u32 127, %v62_v25 }
  0x37   :  { %2385 = vmatpush3.msra.mxu1 %v1342_v28  ;;  %2306 = vmatprep.subr.mxu0 %v1325_v29  ;;  %v1337_v50 = vld [vmem:[#allocation5 + $0x130] sm:$0xff]  ;;  %v2888_v55 = vld [vmem:[#allocation2 + $0x48] sm:$0xff]  ;;  %v1335_v59 = vld [vmem:[#allocation5 + $0x120] sm:$0xff] }
  0x38   :  { %403 = vperm.xlu0 %2599, %v2867_v24   ;;  %2386 = vmatprep.subr.mxu1 %v1357_v31  ;;  %v1318_v60 = vld [vmem:[#allocation5 + $0x98] sm:$0xff]  ;;  %v2892_v61 = vld [vmem:[#allocation2 + $0x60] sm:$0xff]  ;;  %v1349_v6 = vld [vmem:[#allocation5 + $0x190] sm:$0xff]  ;;  %v2948_v29 = vadd.s32 128, %v2944_v27  ;;  %v2951_v31 = vadd.s32 384, %v2944_v27 }
  0x39   :  { %2307 = vmatpush3.msra.mxu0 %v1309_v32  ;;  %2387 = vmatpush3.msra.mxu1 %v1341_v33  ;;  %v1350_v62 = vld [vmem:[#allocation5 + $0x198] sm:$0xff]  ;;  %v71_v5 = vld [vmem:[#allocation2 + $0x20] sm:$0xff]  ;;  %v1301_v7 = vld [vmem:[#allocation5 + $0x10] sm:$0xff]  ;;  %v2957_v33 = vadd.s32 256, %v2944_v27 }
  0x3a   :  { %2592 = vset.pattern.permute.xlu1 %v2794_v8  ;;  %2308 = vmatprep.subr.mxu0 %v1324_v34  ;;  %v1302_v63 = vld [vmem:[#allocation5 + $0x18] sm:$0xff]  ;;  %v1333_v9 = vld [vmem:[#allocation5 + $0x110] sm:$0xff]  ;;  %v1316_v10 = vld [vmem:[#allocation5 + $0x88] sm:$0xff] }
  0x3b   :  { %90 = vperm.xlu1 %2592, %v2863_v18   ;;  %2388 = vmatprep.subr.mxu1 %v1356_v35  ;;  %v1348_v11 = vld [vmem:[#allocation5 + $0x188] sm:$0xff]  ;;  %v1315_v15 = vld [vmem:[#allocation5 + $0x80] sm:$0xff]  ;;  %v2919_v19 = vld [vmem:[#allocation2 + $0x70] sm:$0xff] }
  0x3c   :  { %412 = vperm.xlu0 %2599, %v2871_v30   ;;  %2309 = vmatpush3.msra.mxu0 %v1308_v36  ;;  %v1300_v12 = vld [vmem:[#allocation5 + $0x8] sm:$0xff]  ;;  %v1347_v16 = vld [vmem:[#allocation5 + $0x180] sm:$0xff]  ;;  %v74_v20 = vld [vmem:[#allocation2 + $0x38] sm:$0xff]  ;;  %v2796_v36 = vmov 0.0  }
  0x3d   :  { %2389 = vmatpush3.msra.mxu1 %v1340_v37  ;;  %2310 = vmatprep.subr.mxu0 %v1323_v38  ;;  %v1332_v14 = vld [vmem:[#allocation5 + $0x108] sm:$0xff]  ;;  %v1299_v17 = vld [vmem:[#allocation5] sm:$0xff]  ;;  %v2924_v21 = vld [vmem:[#allocation2 + $0x78] sm:$0xff] }
  0x3e   :  { %2390 = vmatprep.subr.mxu1 %v1355_v39  ;;  %2311 = vmatpush3.msra.mxu0 %v1307_v40  ;;  %v77_v22 = vld [vmem:[#allocation2 + $0x50] sm:$0xff] }
  0x3f   :  { %2593 = vset.pattern.permute.xlu1 %v2792_v0  ;;  %2391 = vmatpush3.msra.mxu1 %v1339_v41 }
  0x40   :  { %2610 = vset.pattern.permute.xlu0 %v2794_v8  ;;  %999 = vperm.xlu1 %2593, %v2854_v4   ;;  %v1317_v4 = vld [vmem:[#allocation5 + $0x90] sm:$0xff] }
  0x41   :  { %84 = vperm.xlu0 %2610, %v2848_v2   ;;  %2312 = vmatprep.subr.mxu0 %v1322_v42  ;;  %v1334_v2 = vld [vmem:[#allocation5 + $0x118] sm:$0xff] }
  0x42   :  { %2392 = vmatprep.subr.mxu1 %v1354_v43  ;;  %2313 = vmatpush3.msra.mxu0 %v1306_v44 }
  0x43   :  { %2393 = vmatpush3.msra.mxu1 %v1338_v45  ;;  %2314 = vmatprep.subr.mxu0 %v1321_v46 }
  0x44   :  { %2594 = vset.pattern.permute.xlu1 %v2793_v1  ;;  %2394 = vmatprep.subr.mxu1 %v1353_v47 }
  0x45   :  { %93 = vperm.xlu0 %2610, %v2852_v3   ;;  %698 = vperm.xlu1 %2594, %v2863_v18  }
  0x46   :  { %2315 = vmatpush3.msra.mxu0 %v1305_v48  ;;  %2395 = vmatpush3.msra.mxu1 %v1337_v50 }
  0x47   :  { %2316 = vmatprep.subr.mxu0 %v1320_v51  ;;  %2396 = vmatprep.subr.mxu1 %v1352_v52 }
  0x48   :  { %2317 = vmatpush3.msra.mxu0 %v1304_v53  ;;  %2397 = vmatpush3.msra.mxu1 %v1336_v54 }
  0x49   :  { %102 = vperm.xlu0 %2610, %v2883_v49   ;;  %2595 = vset.pattern.permute.xlu1 %v2795_v13 }
  0x4a   :  { %397 = vperm.xlu1 %2595, %v2852_v3   ;;  %2318 = vmatprep.subr.mxu0 %v1319_v56 }
  0x4b   :  { %2398 = vmatprep.subr.mxu1 %v1351_v57  ;;  %2319 = vmatpush3.msra.mxu0 %v1303_v58 }
  0x4c   :  { %2399 = vmatpush3.msra.mxu1 %v1335_v59  ;;  %2320 = vmatprep.subr.mxu0 %v1318_v60 }
  0x4d   :  { %111 = vperm.xlu0 %2610, %v2888_v55   ;;  %2400 = vmatprep.subr.mxu1 %v1350_v62 }
  0x4e   :  { %2596 = vset.pattern.permute.xlu1 %v2792_v0  ;;  %2321 = vmatpush3.msra.mxu0 %v1302_v63 }
  0x4f   :  { %1002 = vperm.xlu1 %2596, %v2863_v18   ;;  %2401 = vmatpush3.msra.mxu1 %v1334_v2  ;;  %v1331_v18 = vld [vmem:[#allocation5 + $0x100] sm:$0xff] }
  0x50   :  { %2322 = vmatprep.subr.mxu0 %v1317_v4  ;;  %2402 = vmatprep.subr.mxu1 %v1349_v6 }
  0x51   :  { %120 = vperm.xlu0 %2610, %v2892_v61   ;;  %2323 = vmatpush3.msra.mxu0 %v1301_v7 }
  0x52   :  { %2403 = vmatpush3.msra.mxu1 %v1333_v9  ;;  %2324 = vmatprep.subr.mxu0 %v1316_v10 }
  0x53   :  { %2597 = vset.pattern.permute.xlu1 %v2794_v8  ;;  %2404 = vmatprep.subr.mxu1 %v1348_v11 }
  0x54   :  { %96 = vperm.xlu1 %2597, %v71_v5   ;;  %2325 = vmatpush3.msra.mxu0 %v1300_v12 }
  0x55   :  { %2621 = vset.pattern.permute.xlu0 %v2793_v1  ;;  %2405 = vmatpush3.msra.mxu1 %v1332_v14 }
  0x56   :  { %701 = vperm.xlu0 %2621, %v2852_v3   ;;  %2326 = vmatprep.subr.mxu0 %v1315_v15  ;;  %v2914_v3 = vld [vmem:[#allocation2 + $0x58] sm:$0xff] }
  0x57   :  { %2406 = vmatprep.subr.mxu1 %v1347_v16  ;;  %2327 = vmatpush3.msra.mxu0 %v1299_v17 }
  0x58   :  { %2598 = vset.pattern.permute.xlu1 %v2795_v13  ;;  %2407 = vmatpush3.msra.mxu1 %v1331_v18 }
  0x59   :  { %400 = vperm.xlu1 %2598, %v71_v5  }
  0x5a   :  { %710 = vperm.xlu0 %2621, %v2883_v49  }
  0x5d   :  { %2600 = vset.pattern.permute.xlu1 %v2793_v1 }
  0x5e   :  { %704 = vperm.xlu1 %2600, %v71_v5   ;;  %719 = vperm.xlu0 %2621, %v2888_v55  }
  0x62   :  { %2601 = vset.pattern.permute.xlu1 %v2794_v8  ;;  %728 = vperm.xlu0 %2621, %v2892_v61  }
  0x63   :  { %99 = vperm.xlu1 %2601, %v2867_v24  }
  0x66   :  { %2624 = vset.pattern.permute.xlu0 %v2792_v0 }
  0x67   :  { %2602 = vset.pattern.permute.xlu1 %v2792_v0  ;;  %1014 = vperm.xlu0 %2624, %v2883_v49  }
  0x68   :  { %1008 = vperm.xlu1 %2602, %v71_v5  }
  0x6b   :  { %1023 = vperm.xlu0 %2624, %v2888_v55  }
  0x6c   :  { %2603 = vset.pattern.permute.xlu1 %v2793_v1 }
  0x6d   :  { %707 = vperm.xlu1 %2603, %v2867_v24  }
  0x6f   :  { %1032 = vperm.xlu0 %2624, %v2892_v61  }
  0x71   :  { %2604 = vset.pattern.permute.xlu1 %v2795_v13 }
  0x72   :  { %406 = vperm.xlu1 %2604, %v2883_v49  }
  0x73   :  { %2627 = vset.pattern.permute.xlu0 %v2795_v13 }
  0x74   :  { %421 = vperm.xlu0 %2627, %v2914_v3  }
  0x76   :  { %2605 = vset.pattern.permute.xlu1 %v2792_v0 }
  0x77   :  { %1011 = vperm.xlu1 %2605, %v2867_v24  }
  0x78   :  { %430 = vperm.xlu0 %2627, %v2919_v19  }
  0x7b   :  { %2606 = vset.pattern.permute.xlu1 %v2794_v8 }
  0x7c   :  { %105 = vperm.xlu1 %2606, %v74_v20   ;;  %2632 = vset.pattern.permute.xlu0 %v2794_v8 }
  0x7d   :  { %129 = vperm.xlu0 %2632, %v2924_v21  }
  0x80   :  { %2607 = vset.pattern.permute.xlu1 %v2795_v13 }
  0x81   :  { %409 = vperm.xlu1 %2607, %v74_v20   ;;  %2635 = vset.pattern.permute.xlu0 %v2793_v1 }
  0x82   :  { %737 = vperm.xlu0 %2635, %v2924_v21  }
  0x85   :  { %2608 = vset.pattern.permute.xlu1 %v2793_v1 }
  0x86   :  { %713 = vperm.xlu1 %2608, %v74_v20   ;;  %2636 = vset.pattern.permute.xlu0 %v2792_v0 }
  0x8a   :  { %2609 = vset.pattern.permute.xlu1 %v2794_v8 }
  0x8b   :  { %108 = vperm.xlu1 %2609, %v2871_v30  }
  0x8f   :  { %2611 = vset.pattern.permute.xlu1 %v2792_v0 }
  0x90   :  { %1017 = vperm.xlu1 %2611, %v74_v20  }
  0x94   :  { %2612 = vset.pattern.permute.xlu1 %v2793_v1 }
  0x95   :  { %716 = vperm.xlu1 %2612, %v2871_v30  }
  0x99   :  { %2613 = vset.pattern.permute.xlu1 %v2795_v13 }
  0x9a   :  { %415 = vperm.xlu1 %2613, %v2888_v55  }
  0x9e   :  { %2614 = vset.pattern.permute.xlu1 %v2792_v0 }
  0x9f   :  { %1020 = vperm.xlu1 %2614, %v2871_v30  }
  0xa2   :  { %v693_v23 = vpop.permute.xlu1 %692  ;;  %v997_v24 = vpop.permute.xlu0 %996 }
  0xa3   :  { %2615 = vset.pattern.permute.xlu1 %v2794_v8  ;;  %vm740_vm0 = vcmp.eq.s32.totalorder %v2948_v29, %v693_v23  ;;  %vm1044_vm1 = vcmp.eq.s32.totalorder %v2948_v29, %v997_v24  ;;  %vm742_vm2 = vcmp.eq.s32.totalorder %v2951_v31, %v693_v23  ;;  %vm1046_vm3 = vcmp.eq.s32.totalorder %v2951_v31, %v997_v24 }
  0xa4   :  { %114 = vperm.xlu1 %2615, %v77_v22   ;;  %vm1043_vm4 = vcmp.eq.s32.totalorder %v2944_v27, %v997_v24  ;;  %vm1045_vm5 = vcmp.eq.s32.totalorder %v2957_v33, %v997_v24  ;;  %vm739_vm6 = vcmp.eq.s32.totalorder %v2944_v27, %v693_v23  ;;  %v2972_v37 = vsel %vm740_vm0, 1.0, %v2796_v36 }
  0xa5   :  { %v2975_v38 = vsel %vm1044_vm1, 1.0, %v2796_v36  ;;  %v2978_v39 = vsel %vm742_vm2, 1.0, %v2796_v36  ;;  %v2981_v40 = vsel %vm1046_vm3, 1.0, %v2796_v36  ;;  %vm741_vm10 = vcmp.eq.s32.totalorder %v2957_v33, %v693_v23 }
  0xa6   :  { %v1006_v26 = vpop.permute.xlu0 %1005  ;;  %v2992_v42 = vsel %vm739_vm6, 1.0, %v2796_v36  ;;  %v2997_v43 = vsel %vm1043_vm4, 1.0, %v2796_v36  ;;  %v3002_v44 = vsel %vm1045_vm5, 1.0, %v2796_v36  ;;  %v3011_v46 = vsel %vm741_vm10, 1.0, %v2796_v36 }
  0xa7   :  { %v88_v28 = vpop.permute.xlu1 %87  ;;  %vm1055_vm12 = vcmp.eq.s32.totalorder %v2944_v27, %v1006_v26  ;;  %vm1056_vm13 = vcmp.eq.s32.totalorder %v2948_v29, %v1006_v26  ;;  %vm1057_vm14 = vcmp.eq.s32.totalorder %v2957_v33, %v1006_v26  ;;  %vm1058_vm15 = vcmp.eq.s32.totalorder %v2951_v31, %v1006_v26 }
  0xa8   :  { %2616 = vset.pattern.permute.xlu1 %v2795_v13  ;;  %vm135_vm7 = vcmp.eq.s32.totalorder %v2944_v27, %v88_v28  ;;  %vm136_vm8 = vcmp.eq.s32.totalorder %v2948_v29, %v88_v28  ;;  %vm138_vm9 = vcmp.eq.s32.totalorder %v2951_v31, %v88_v28  ;;  %vm137_vm11 = vcmp.eq.s32.totalorder %v2957_v33, %v88_v28 }
  0xa9   :  { %418 = vperm.xlu1 %2616, %v77_v22   ;;  %v2043_v47 = vsel %vm136_vm8, 1.0, %v2796_v36  ;;  %v2045_v48 = vsel %vm138_vm9, 1.0, %v2796_v36  ;;  %v3018_v49 = vsel %vm135_vm7, 1.0, %v2796_v36  ;;  %v3029_v51 = vsel %vm137_vm11, 1.0, %v2796_v36 }
  0xaa   :  { %v3041_v52 = vsel %vm1056_vm13, 1.0, %v2796_v36  ;;  %v3046_v53 = vsel %vm1058_vm15, 1.0, %v2796_v36  ;;  %v3051_v54 = vsel %vm1055_vm12, 1.0, %v2796_v36  ;;  %v3056_v55 = vsel %vm1057_vm14, 1.0, %v2796_v36 }
  0xab   :  { %v389_v30 = vpop.permute.xlu0 %388 }
  0xac   :  { %v2953_v32 = vpop.permute.xlu1 %391  ;;  %vm435_vm0 = vcmp.eq.s32.totalorder %v2944_v27, %v389_v30  ;;  %vm436_vm1 = vcmp.eq.s32.totalorder %v2948_v29, %v389_v30  ;;  %vm437_vm2 = vcmp.eq.s32.totalorder %v2957_v33, %v389_v30  ;;  %vm438_vm3 = vcmp.eq.s32.totalorder %v2951_v31, %v389_v30 }
  0xad   :  { %2617 = vset.pattern.permute.xlu1 %v2793_v1  ;;  %vm439_vm4 = vcmp.eq.s32.totalorder %v2944_v27, %v2953_v32  ;;  %vm440_vm5 = vcmp.eq.s32.totalorder %v2948_v29, %v2953_v32  ;;  %vm442_vm6 = vcmp.eq.s32.totalorder %v2951_v31, %v2953_v32  ;;  %v2102_v56 = vsel %vm435_vm0, 1.0, %v2796_v36 }
  0xae   :  { %722 = vperm.xlu1 %2617, %v77_v22   ;;  %v2104_v57 = vsel %vm437_vm2, 1.0, %v2796_v36  ;;  %vm441_vm7 = vcmp.eq.s32.totalorder %v2957_v33, %v2953_v32  ;;  %v2103_v58 = vsel %vm436_vm1, 1.0, %v2796_v36  ;;  %v2105_v60 = vsel %vm438_vm3, 1.0, %v2796_v36 }
  0xaf   :  { %v2959_v34 = vpop.permute.xlu0 %394  ;;  %v2107_v62 = vsel %vm440_vm5, 1.0, %v2796_v36  ;;  %v2109_v63 = vsel %vm442_vm6, 1.0, %v2796_v36  ;;  %v2106_v2 = vsel %vm439_vm4, 1.0, %v2796_v36  ;;  %v2108_v18 = vsel %vm441_vm7, 1.0, %v2796_v36 }
  0xb0   :  { %vm443_vm8 = vcmp.eq.s32.totalorder %v2944_v27, %v2959_v34  ;;  %vm444_vm9 = vcmp.eq.s32.totalorder %v2948_v29, %v2959_v34  ;;  %vm445_vm10 = vcmp.eq.s32.totalorder %v2957_v33, %v2959_v34  ;;  %vm446_vm11 = vcmp.eq.s32.totalorder %v2951_v31, %v2959_v34 }
  0xb1   :  { %v2967_v35 = vpop.permute.xlu1 %695  ;;  %v3100_v12 = vsel %vm443_vm8, 1.0, %v2796_v36  ;;  %v3114_v20 = vsel %vm444_vm9, 1.0, %v2796_v36  ;;  %v3126_v23 = vsel %vm446_vm11, 1.0, %v2796_v36  ;;  %v632_v24 = vadd.f32 %v2107_v62, %v2043_v47 }
  0xb2   :  { %2618 = vset.pattern.permute.xlu1 %v2794_v8  ;;  %vm744_vm0 = vcmp.eq.s32.totalorder %v2948_v29, %v2967_v35  ;;  %vm746_vm1 = vcmp.eq.s32.totalorder %v2951_v31, %v2967_v35  ;;  %v634_v26 = vadd.f32 %v2109_v63, %v2045_v48  ;;  %vm743_vm2 = vcmp.eq.s32.totalorder %v2944_v27, %v2967_v35 }
  0xb3   :  { %117 = vperm.xlu1 %2618, %v2914_v3   ;;  %v2987_v41 = vpop.permute.xlu0 %403  ;;  %v2171_v25 = vsel %vm744_vm0, 1.0, %v2796_v36  ;;  %v2173_v28 = vsel %vm746_vm1, 1.0, %v2796_v36  ;;  %v631_v48 = vadd.f32 %v2106_v2, %v3018_v49  ;;  %vm745_vm5 = vcmp.eq.s32.totalorder %v2957_v33, %v2967_v35 }
  0xb4   :  { %v633_v49 = vadd.f32 %v2108_v18, %v3029_v51  ;;  %vm456_vm0 = vcmp.eq.s32.totalorder %v2948_v29, %v2987_v41  ;;  %vm457_vm1 = vcmp.eq.s32.totalorder %v2957_v33, %v2987_v41 }
  0xb6   :  { %v3008_v45 = vpop.permute.xlu1 %90 }
  0xb7   :  { %2619 = vset.pattern.permute.xlu1 %v2792_v0  ;;  %v3024_v50 = vpop.permute.xlu0 %412  ;;  %vm140_vm8 = vcmp.eq.s32.totalorder %v2948_v29, %v3008_v45  ;;  %vm142_vm9 = vcmp.eq.s32.totalorder %v2951_v31, %v3008_v45  ;;  %vm139_vm11 = vcmp.eq.s32.totalorder %v2944_v27, %v3008_v45 }
  0xb8   :  { %1026 = vperm.xlu1 %2619, %v77_v22   ;;  %v3120_v22 = vsel %vm445_vm10, 1.0, %v2796_v36  ;;  %vm455_vm10 = vcmp.eq.s32.totalorder %v2944_v27, %v2987_v41 }
  0xbb   :  { %v3065_v59 = vpop.permute.xlu1 %999 }
  0xbc   :  { %v85_v4 = vpop.permute.xlu0 %84  ;;  %2620 = vset.pattern.permute.xlu1 %v2793_v1  ;;  %vm1048_vm3 = vcmp.eq.s32.totalorder %v2948_v29, %v3065_v59  ;;  %vm1050_vm4 = vcmp.eq.s32.totalorder %v2951_v31, %v3065_v59  ;;  %vm1047_vm6 = vcmp.eq.s32.totalorder %v2944_v27, %v3065_v59  ;;  %vm1049_vm7 = vcmp.eq.s32.totalorder %v2957_v33, %v3065_v59 }
  0xbd   :  { %vm131_vm12 = vcmp.eq.s32.totalorder %v2944_v27, %v85_v4  ;;  %vm132_vm13 = vcmp.eq.s32.totalorder %v2948_v29, %v85_v4  ;;  %vm133_vm14 = vcmp.eq.s32.totalorder %v2957_v33, %v85_v4  ;;  %vm134_vm15 = vcmp.eq.s32.totalorder %v2951_v31, %v85_v4  ;;  %725 = vperm.xlu1 %2620, %v2914_v3  }
  0xbe   :  { %v2038_v5 = vsel %vm131_vm12, 1.0, %v2796_v36  ;;  %v2040_v6 = vsel %vm133_vm14, 1.0, %v2796_v36  ;;  %v2039_v7 = vsel %vm132_vm13, 1.0, %v2796_v36  ;;  %v2041_v9 = vsel %vm134_vm15, 1.0, %v2796_v36 }
  0xbf   :  { %v628_v10 = vadd.f32 %v2103_v58, %v2039_v7  ;;  %v630_v11 = vadd.f32 %v2105_v60, %v2041_v9  ;;  %v627_v14 = vadd.f32 %v2102_v56, %v2038_v5  ;;  %v629_v15 = vadd.f32 %v2104_v57, %v2040_v6  ;;  %v3179_v5 = vld [vmem:[#allocation2 + $0x68] sm:$0xff] }
  0xc0   :  { %v3102_v16 = vpop.permute.xlu1 %698  ;;  %v3104_v17 = vpop.permute.xlu0 %93  ;;  %v938_v56 = vadd.f32 %v2173_v28, %v634_v26  ;;  %v2170_v57 = vsel %vm743_vm2, 1.0, %v2796_v36  ;;  %v2172_v60 = vsel %vm745_vm5, 1.0, %v2796_v36  ;;  %v2234_v2 = vsel %vm1047_vm6, 1.0, %v2796_v36 }
  0xc1   :  { %2622 = vset.pattern.permute.xlu1 %v2795_v13  ;;  %v932_v30 = vadd.f32 %v2972_v37, %v628_v10  ;;  %v934_v32 = vadd.f32 %v2978_v39, %v630_v11  ;;  %v933_v47 = vadd.f32 %v3011_v46, %v629_v15  ;;  %v936_v39 = vadd.f32 %v2171_v25, %v632_v24 }
  0xc2   :  { %424 = vperm.xlu1 %2622, %v2892_v61   ;;  %v931_v61 = vadd.f32 %v2992_v42, %v627_v14  ;;  %v2235_v42 = vsel %vm1048_vm3, 1.0, %v2796_v36  ;;  %v2237_v46 = vsel %vm1050_vm4, 1.0, %v2796_v36  ;;  %v2047_v6 = vsel %vm140_vm8, 1.0, %v2796_v36 }
  0xc3   :  { %v1236_v35 = vadd.f32 %v2975_v38, %v932_v30  ;;  %v1238_v58 = vadd.f32 %v2981_v40, %v934_v32  ;;  %v1237_v51 = vadd.f32 %v3002_v44, %v933_v47  ;;  %v1240_v38 = vadd.f32 %v2235_v42, %v936_v39 }
  0xc4   :  { %v3140_v34 = vpop.permute.xlu0 %102  ;;  %v1235_v62 = vadd.f32 %v2997_v43, %v931_v61  ;;  %v1242_v4 = vadd.f32 %v2237_v46, %v938_v56  ;;  %v935_v40 = vadd.f32 %v2170_v57, %v631_v48  ;;  %v937_v43 = vadd.f32 %v2172_v60, %v633_v49 }
  0xc5   :  { %v3147_v37 = vpop.permute.xlu1 %397  ;;  %1434 = vmatprep.mubr.f32.mxu0 %v1236_v35  ;;  %1579 = vmatprep.mubr.f32.mxu1 %v1238_v58  ;;  %vm748_vm12 = vcmp.eq.s32.totalorder %v2948_v29, %v3102_v16  ;;  %v2049_v7 = vsel %vm142_vm9, 1.0, %v2796_v36  ;;  %vm750_vm14 = vcmp.eq.s32.totalorder %v2951_v31, %v3102_v16  ;;  %vm141_vm2 = vcmp.eq.s32.totalorder %v2957_v33, %v3008_v45 }
  0xc6   :  { %2623 = vset.pattern.permute.xlu1 %v2792_v0  ;;  %1435 = vmatmul.mubr.f32.vlgmr.msra.gmra.mxu0 %v1235_v62  ;;  %v1239_v59 = vadd.f32 %v2234_v2, %v935_v40  ;;  %v2175_v10 = vsel %vm748_vm12, 1.0, %v2796_v36  ;;  %v636_v14 = vadd.f32 %v3114_v20, %v2047_v6  ;;  %vm458_vm3 = vcmp.eq.s32.totalorder %v2951_v31, %v2987_v41 }
  0xc7   :  { %1029 = vperm.xlu1 %2623, %v2914_v3   ;;  %v2236_v3 = vsel %vm1049_vm7, 1.0, %v2796_v36  ;;  %1580 = vmatmul.mubr.f32.vlgmr.msra.gmra.mxu1 %v1237_v51  ;;  %v3213_v15 = vsel %vm455_vm10, 1.0, %v2796_v36  ;;  %v638_v24 = vadd.f32 %v3126_v23, %v2049_v7  ;;  %v2177_v20 = vsel %vm750_vm14, 1.0, %v2796_v36 }
  0xc8   :  { %v3168_v63 = vpop.permute.xlu0 %111  ;;  %1439 = vmatprep.mubr.f32.mxu0 %v1240_v38  ;;  %1584 = vmatprep.mubr.f32.mxu1 %v1242_v4  ;;  %v1241_v9 = vadd.f32 %v2236_v3, %v937_v43  ;;  %v940_v25 = vadd.f32 %v2175_v10, %v636_v14  ;;  %v2046_v30 = vsel %vm139_vm11, 1.0, %v2796_v36  ;;  %v3231_v32 = vsel %vm456_vm0, 1.0, %v2796_v36 }
  0xc9   :  { %v3237_v23 = vsel %vm457_vm1, 1.0, %v2796_v36  ;;  %v942_v61 = vadd.f32 %v2177_v20, %v638_v24  ;;  %v2048_v47 = vsel %vm141_vm2, 1.0, %v2796_v36  ;;  %v3244_v48 = vsel %vm458_vm3, 1.0, %v2796_v36 }
  0xca   :  { %v1003_v44 = vpop.permute.xlu1 %1002  ;;  %1440 = vmatmul.mubr.f32.gmra.mxu0 %v1239_v59  ;;  %vm143_vm4 = vcmp.eq.s32.totalorder %v2944_v27, %v3104_v17  ;;  %vm144_vm5 = vcmp.eq.s32.totalorder %v2948_v29, %v3104_v17  ;;  %vm145_vm6 = vcmp.eq.s32.totalorder %v2957_v33, %v3104_v17  ;;  %v635_v56 = vadd.f32 %v3100_v12, %v2046_v30 }
  0xcb   :  { %vm1052_vm13 = vcmp.eq.s32.totalorder %v2948_v29, %v1003_v44  ;;  %2625 = vset.pattern.permute.xlu1 %v2794_v8  ;;  %vm1054_vm15 = vcmp.eq.s32.totalorder %v2951_v31, %v1003_v44  ;;  %1585 = vmatmul.mubr.f32.gmra.mxu1 %v1241_v9  ;;  %vm747_vm7 = vcmp.eq.s32.totalorder %v2944_v27, %v3102_v16  ;;  %v2051_v60 = vsel %vm144_vm5, 1.0, %v2796_v36 }
  0xcc   :  { %123 = vperm.xlu1 %2625, %v3179_v5   ;;  %v3204_v11 = vpop.permute.xlu0 %120  ;;  %v2239_v18 = vsel %vm1052_vm13, 1.0, %v2796_v36  ;;  %v2241_v26 = vsel %vm1054_vm15, 1.0, %v2796_v36  ;;  %v2174_v45 = vsel %vm747_vm7, 1.0, %v2796_v36  ;;  %vm1051_vm8 = vcmp.eq.s32.totalorder %v2944_v27, %v1003_v44 }
  0xcd   :  { %v1244_v39 = vadd.f32 %v2239_v18, %v940_v25  ;;  %v1246_v41 = vadd.f32 %v2241_v26, %v942_v61  ;;  %v637_v57 = vadd.f32 %v3120_v22, %v2048_v47  ;;  %vm749_vm9 = vcmp.eq.s32.totalorder %v2957_v33, %v3102_v16 }
  0xce   :  { %v939_v46 = vadd.f32 %v2174_v45, %v635_v56  ;;  %v2238_v12 = vsel %vm1051_vm8, 1.0, %v2796_v36  ;;  %v2176_v49 = vsel %vm749_vm9, 1.0, %v2796_v36  ;;  %vm1053_vm10 = vcmp.eq.s32.totalorder %v2957_v33, %v1003_v44 }
  0xcf   :  { %v3221_v28 = vpop.permute.xlu1 %96  ;;  %1444 = vmatprep.mubr.f32.mxu0 %v1244_v39  ;;  %1589 = vmatprep.mubr.f32.mxu1 %v1246_v41  ;;  %vm146_vm11 = vcmp.eq.s32.totalorder %v2951_v31, %v3104_v17  ;;  %v2050_v22 = vsel %vm143_vm4, 1.0, %v2796_v36  ;;  %v941_v16 = vadd.f32 %v2176_v49, %v637_v57  ;;  %v2240_v58 = vsel %vm1053_vm10, 1.0, %v2796_v36 }
  0xd0   :  { %2626 = vset.pattern.permute.xlu1 %v2795_v13  ;;  %v2052_v62 = vsel %vm145_vm6, 1.0, %v2796_v36  ;;  %v1243_v51 = vadd.f32 %v2238_v12, %v939_v46  ;;  %vm447_vm0 = vcmp.eq.s32.totalorder %v2944_v27, %v3147_v37  ;;  %vm448_vm1 = vcmp.eq.s32.totalorder %v2948_v29, %v3147_v37 }
  0xd1   :  { %427 = vperm.xlu1 %2626, %v3179_v5   ;;  %v702_v42 = vpop.permute.xlu0 %701  ;;  %v1245_v2 = vadd.f32 %v2240_v58, %v941_v16  ;;  %vm449_vm2 = vcmp.eq.s32.totalorder %v2957_v33, %v3147_v37  ;;  %vm450_vm3 = vcmp.eq.s32.totalorder %v2951_v31, %v3147_v37  ;;  %v2053_v38 = vsel %vm146_vm11, 1.0, %v2796_v36 }
  0xd2   :  { %vm751_vm12 = vcmp.eq.s32.totalorder %v2944_v27, %v702_v42  ;;  %vm752_vm13 = vcmp.eq.s32.totalorder %v2948_v29, %v702_v42  ;;  %vm753_vm14 = vcmp.eq.s32.totalorder %v2957_v33, %v702_v42  ;;  %vm754_vm15 = vcmp.eq.s32.totalorder %v2951_v31, %v702_v42  ;;  %1445 = vmatmul.mubr.f32.gmra.mxu0 %v1243_v51 }
  0xd3   :  { %vm155_vm4 = vcmp.eq.s32.totalorder %v2944_v27, %v3140_v34  ;;  %vm156_vm5 = vcmp.eq.s32.totalorder %v2948_v29, %v3140_v34  ;;  %1590 = vmatmul.mubr.f32.gmra.mxu1 %v1245_v2  ;;  %v2178_v4 = vsel %vm751_vm12, 1.0, %v2796_v36  ;;  %v2179_v3 = vsel %vm752_vm13, 1.0, %v2796_v36 }
  0xd4   :  { %v3265_v35 = vpop.permute.xlu1 %400  ;;  %v2180_v43 = vsel %vm753_vm14, 1.0, %v2796_v36  ;;  %v2181_v17 = vsel %vm754_vm15, 1.0, %v2796_v36  ;;  %v2115_v44 = vsel %vm448_vm1, 1.0, %v2796_v36  ;;  %v2117_v6 = vsel %vm450_vm3, 1.0, %v2796_v36 }
  0xd5   :  { %2628 = vset.pattern.permute.xlu1 %v2793_v1  ;;  %vm452_vm6 = vcmp.eq.s32.totalorder %v2948_v29, %v3265_v35  ;;  %v2114_v59 = vsel %vm447_vm0, 1.0, %v2796_v36  ;;  %v2116_v7 = vsel %vm449_vm2, 1.0, %v2796_v36  ;;  %v640_v9 = vadd.f32 %v2115_v44, %v2051_v60 }
  0xd6   :  { %731 = vperm.xlu1 %2628, %v3179_v5   ;;  %v642_v10 = vadd.f32 %v2117_v6, %v2053_v38  ;;  %v639_v14 = vadd.f32 %v2114_v59, %v2050_v22  ;;  %v641_v18 = vadd.f32 %v2116_v7, %v2052_v62  ;;  %vm157_vm7 = vcmp.eq.s32.totalorder %v2957_v33, %v3140_v34 }
  0xd7   :  { %v3332_v24 = vsel %vm155_vm4, 1.0, %v2796_v36  ;;  %vm147_vm8 = vcmp.eq.s32.totalorder %v2944_v27, %v3221_v28  ;;  %vm454_vm9 = vcmp.eq.s32.totalorder %v2951_v31, %v3265_v35  ;;  %vm148_vm10 = vcmp.eq.s32.totalorder %v2948_v29, %v3221_v28 }
  0xd8   :  { %v946_v37 = vadd.f32 %v2181_v17, %v642_v10  ;;  %v943_v25 = vadd.f32 %v2178_v4, %v639_v14  ;;  %v945_v20 = vadd.f32 %v2180_v43, %v641_v18  ;;  %vm149_vm11 = vcmp.eq.s32.totalorder %v2957_v33, %v3221_v28 }
  0xd9   :  { %v3307_v40 = vpop.permute.xlu1 %704  ;;  %vm150_vm12 = vcmp.eq.s32.totalorder %v2951_v31, %v3221_v28  ;;  %v2119_v30 = vsel %vm452_vm6, 1.0, %v2796_v36  ;;  %vm158_vm13 = vcmp.eq.s32.totalorder %v2951_v31, %v3140_v34  ;;  %v3359_v56 = vsel %vm156_vm5, 1.0, %v2796_v36 }
  0xda   :  { %2629 = vset.pattern.permute.xlu1 %v2794_v8  ;;  %v944_v8 = vadd.f32 %v2179_v3, %v640_v9  ;;  %v1250_v47 = vadd.f32 %v3046_v53, %v946_v37  ;;  %v1247_v39 = vadd.f32 %v3051_v54, %v943_v25  ;;  %v1249_v41 = vadd.f32 %v3056_v55, %v945_v20 }
  0xdb   :  { %126 = vperm.xlu1 %2629, %v2919_v19   ;;  %v2121_v45 = vsel %vm454_vm9, 1.0, %v2796_v36  ;;  %vm756_vm14 = vcmp.eq.s32.totalorder %v2948_v29, %v3307_v40  ;;  %vm758_vm15 = vcmp.eq.s32.totalorder %v2951_v31, %v3307_v40  ;;  %v3376_v53 = vsel %vm157_vm7, 1.0, %v2796_v36 }
  0xdc   :  { %v1248_v61 = vadd.f32 %v3041_v52, %v944_v8  ;;  %v3370_v52 = vpop.permute.xlu0 %710  ;;  %v2054_v54 = vsel %vm147_vm8, 1.0, %v2796_v36  ;;  %v2055_v55 = vsel %vm148_vm10, 1.0, %v2796_v36  ;;  %1594 = vmatprep.mubr.f32.mxu1 %v1250_v47  ;;  %v2057_v57 = vsel %vm150_vm12, 1.0, %v2796_v36 }
  0xdd   :  { %vm451_vm0 = vcmp.eq.s32.totalorder %v2944_v27, %v3265_v35  ;;  %vm453_vm1 = vcmp.eq.s32.totalorder %v2957_v33, %v3265_v35  ;;  %v644_v42 = vadd.f32 %v2119_v30, %v2055_v55  ;;  %1595 = vmatmul.mubr.f32.gmra.mxu1 %v1249_v41  ;;  %v646_v12 = vadd.f32 %v2121_v45, %v2057_v57 }
  0xde   :  { %v100_v26 = vpop.permute.xlu1 %99  ;;  %1449 = vmatprep.mubr.f32.mxu0 %v1248_v61  ;;  %v2183_v49 = vsel %vm756_vm14, 1.0, %v2796_v36  ;;  %v2185_v28 = vsel %vm758_vm15, 1.0, %v2796_v36  ;;  %vm755_vm3 = vcmp.eq.s32.totalorder %v2944_v27, %v3307_v40  ;;  %v2118_v35 = vsel %vm451_vm0, 1.0, %v2796_v36 }
  0xdf   :  { %2630 = vset.pattern.permute.xlu1 %v2792_v0  ;;  %1450 = vmatmul.mubr.f32.gmra.mxu0 %v1247_v39  ;;  %vm151_vm4 = vcmp.eq.s32.totalorder %v2944_v27, %v100_v26  ;;  %vm152_vm5 = vcmp.eq.s32.totalorder %v2948_v29, %v100_v26  ;;  %v2120_v22 = vsel %vm453_vm1, 1.0, %v2796_v36  ;;  %vm153_vm7 = vcmp.eq.s32.totalorder %v2957_v33, %v100_v26 }
  0xe0   :  { %1035 = vperm.xlu1 %2630, %v3179_v5   ;;  %v2056_v5 = vsel %vm149_vm11, 1.0, %v2796_v36  ;;  %vm154_vm8 = vcmp.eq.s32.totalorder %v2951_v31, %v100_v26  ;;  %vm757_vm9 = vcmp.eq.s32.totalorder %v2957_v33, %v3307_v40  ;;  %v948_v16 = vadd.f32 %v2183_v49, %v644_v42  ;;  %v3421_v62 = vpop.permute.xlu0 %719 }
  0xe1   :  { %v950_v60 = vadd.f32 %v2185_v28, %v646_v12  ;;  %v2058_v51 = vsel %vm151_vm4, 1.0, %v2796_v36  ;;  %v2059_v2 = vsel %vm152_vm5, 1.0, %v2796_v36  ;;  %v2060_v3 = vsel %vm153_vm7, 1.0, %v2796_v36 }
  0xe2   :  { %v2061_v43 = vsel %vm154_vm8, 1.0, %v2796_v36  ;;  %v643_v44 = vadd.f32 %v2118_v35, %v2054_v54  ;;  %v2184_v6 = vsel %vm757_vm9, 1.0, %v2796_v36  ;;  %v2065_v59 = vsel %vm158_vm13, 1.0, %v2796_v36 }
  0xe3   :  { %v1009_v46 = vpop.permute.xlu1 %1008  ;;  %v645_v7 = vadd.f32 %v2120_v22, %v2056_v5  ;;  %v3438_v9 = vadd.f32 %v3213_v15, %v2058_v51  ;;  %vm763_vm12 = vcmp.eq.s32.totalorder %v2944_v27, %v3370_v52  ;;  %v648_v10 = vadd.f32 %v3231_v32, %v2059_v2  ;;  %v1690_v51 = vld [vmem:[#allocation7 + $0x70] sm:$0xff] }
  0xe4   :  { %vm1060_vm2 = vcmp.eq.s32.totalorder %v2948_v29, %v1009_v46  ;;  %vm1062_vm6 = vcmp.eq.s32.totalorder %v2951_v31, %v1009_v46  ;;  %2631 = vset.pattern.permute.xlu1 %v2793_v1  ;;  %v2182_v1 = vsel %vm755_vm3, 1.0, %v2796_v36  ;;  %vm1059_vm10 = vcmp.eq.s32.totalorder %v2944_v27, %v1009_v46  ;;  %v3454_v37 = vpop.permute.xlu0 %728 }
  0xe5   :  { %734 = vperm.xlu1 %2631, %v2919_v19   ;;  %v2247_v58 = vsel %vm1060_vm2, 1.0, %v2796_v36  ;;  %v2249_v38 = vsel %vm1062_vm6, 1.0, %v2796_v36  ;;  %vm1061_vm11 = vcmp.eq.s32.totalorder %v2957_v33, %v1009_v46  ;;  %v3444_v14 = vadd.f32 %v3237_v23, %v2060_v3 }
  0xe6   :  { %v1252_v40 = vadd.f32 %v2247_v58, %v948_v16  ;;  %v1254_v17 = vadd.f32 %v2249_v38, %v950_v60  ;;  %v947_v18 = vadd.f32 %v2182_v1, %v643_v44  ;;  %vm764_vm13 = vcmp.eq.s32.totalorder %v2948_v29, %v3370_v52  ;;  %v1691_v60 = vld [vmem:[#allocation7 + $0x78] sm:$0xff] }
  0xe7   :  { %v2246_v34 = vsel %vm1059_vm10, 1.0, %v2796_v36  ;;  %v949_v15 = vadd.f32 %v2184_v6, %v645_v7  ;;  %v2248_v8 = vsel %vm1061_vm11, 1.0, %v2796_v36  ;;  %vm765_vm14 = vcmp.eq.s32.totalorder %v2957_v33, %v3370_v52  ;;  %2488 = vmatprep.subr.mxu0 %v1691_v60  ;;  %2544 = vmatprep.subr.mxu1 %v1691_v60 }
  0xe8   :  { %v708_v4 = vpop.permute.xlu1 %707  ;;  %1454 = vmatprep.mubr.f32.mxu0 %v1252_v40  ;;  %1599 = vmatprep.mubr.f32.mxu1 %v1254_v17  ;;  %vm766_vm15 = vcmp.eq.s32.totalorder %v2951_v31, %v3370_v52  ;;  %v3464_v23 = vsel %vm763_vm12, 1.0, %v2796_v36  ;;  %v2191_v20 = vsel %vm764_vm13, 1.0, %v2796_v36  ;;  %v1015_v57 = vpop.permute.xlu0 %1014  ;;  %v2192_v2 = vsel %vm765_vm14, 1.0, %v2796_v36 }
  0xe9   :  { %2633 = vset.pattern.permute.xlu1 %v2795_v13  ;;  %v650_v13 = vadd.f32 %v3244_v48, %v2061_v43  ;;  %vm759_vm0 = vcmp.eq.s32.totalorder %v2944_v27, %v708_v4  ;;  %v1251_v48 = vadd.f32 %v2246_v34, %v947_v18  ;;  %vm760_vm1 = vcmp.eq.s32.totalorder %v2948_v29, %v708_v4  ;;  %v3536_v18 = vld [vmem:[#allocation7 + $0x60] sm:$0xff] }
  0xea   :  { %433 = vperm.xlu1 %2633, %v2924_v21   ;;  %vm761_vm2 = vcmp.eq.s32.totalorder %v2957_v33, %v708_v4  ;;  %vm762_vm3 = vcmp.eq.s32.totalorder %v2951_v31, %v708_v4  ;;  %v1253_v25 = vadd.f32 %v2248_v8, %v949_v15  ;;  %v2193_v47 = vsel %vm766_vm15, 1.0, %v2796_v36  ;;  %2489 = vmatpush3.msra.mxu0 %v1691_v60  ;;  %v3548_v15 = vld [vmem:[#allocation7 + $0x58] sm:$0xff] }
  0xeb   :  { %1455 = vmatmul.mubr.f32.gmra.mxu0 %v1251_v48  ;;  %v2187_v39 = vsel %vm760_vm1, 1.0, %v2796_v36  ;;  %v2189_v41 = vsel %vm762_vm3, 1.0, %v2796_v36  ;;  %vm1068_vm12 = vcmp.eq.s32.totalorder %v2948_v29, %v1015_v57  ;;  %vm1067_vm13 = vcmp.eq.s32.totalorder %v2944_v27, %v1015_v57  ;;  %2490 = vmatprep.subr.mxu0 %v1690_v51 }
  0xec   :  { %1600 = vmatmul.mubr.f32.gmra.mxu1 %v1253_v25  ;;  %v952_v46 = vadd.f32 %v2187_v39, %v648_v10  ;;  %v954_v49 = vadd.f32 %v2189_v41, %v650_v13  ;;  %vm1070_vm15 = vcmp.eq.s32.totalorder %v2951_v31, %v1015_v57  ;;  %v2255_v3 = vsel %vm1068_vm12, 1.0, %v2796_v36  ;;  %v1689_v10 = vld [vmem:[#allocation7 + $0x68] sm:$0xff]  ;;  %2491 = vmatpush3.msra.mxu0 %v1690_v51 }
  0xed   :  { %v407_v32 = vpop.permute.xlu1 %406  ;;  %v2257_v17 = vsel %vm1070_vm15, 1.0, %v2796_v36  ;;  %v2254_v44 = vsel %vm1067_vm13, 1.0, %v2796_v36  ;;  %2560 = vmatpush3.msra.mxu1 %v1691_v60  ;;  %vm467_vm14 = vcmp.eq.s32.totalorder %v2944_v27, %v3024_v50  ;;  %2492 = vmatprep.subr.mxu0 %v1689_v10  ;;  %vm468_vm1 = vcmp.eq.s32.totalorder %v2948_v29, %v3024_v50 }
  0xee   :  { %vm459_vm4 = vcmp.eq.s32.totalorder %v2944_v27, %v407_v32  ;;  %vm460_vm5 = vcmp.eq.s32.totalorder %v2948_v29, %v407_v32  ;;  %vm461_vm6 = vcmp.eq.s32.totalorder %v2957_v33, %v407_v32  ;;  %2634 = vset.pattern.permute.xlu1 %v2792_v0  ;;  %vm462_vm7 = vcmp.eq.s32.totalorder %v2951_v31, %v407_v32  ;;  %v3568_v32 = vld [vmem:[#allocation7 + $0x50] sm:$0xff] }
  0xef   :  { %v2126_v26 = vsel %vm459_vm4, 1.0, %v2796_v36  ;;  %v2127_v30 = vsel %vm460_vm5, 1.0, %v2796_v36  ;;  %v2128_v61 = vsel %vm461_vm6, 1.0, %v2796_v36  ;;  %1038 = vperm.xlu1 %2634, %v2919_v19   ;;  %v2186_v0 = vsel %vm759_vm0, 1.0, %v2796_v36  ;;  %2545 = vmatprep.subr.mxu1 %v1690_v51 }
  0xf0   :  { %v2188_v19 = vsel %vm761_vm2, 1.0, %v2796_v36  ;;  %v2129_v54 = vsel %vm462_vm7, 1.0, %v2796_v36  ;;  %v651_v55 = vadd.f32 %v2126_v26, %v3332_v24  ;;  %v652_v5 = vadd.f32 %v2127_v30, %v3359_v56  ;;  %2493 = vmatpush3.msra.mxu0 %v1689_v10  ;;  %2561 = vmatpush3.msra.mxu1 %v1690_v51 }
  0xf1   :  { %v653_v42 = vadd.f32 %v2128_v61, %v3376_v53  ;;  %v654_v24 = vadd.f32 %v2129_v54, %v2065_v59  ;;  %v953_v1 = vadd.f32 %v2188_v19, %v3444_v14  ;;  %vm1069_vm0 = vcmp.eq.s32.totalorder %v2957_v33, %v1015_v57  ;;  %2494 = vmatprep.subr.mxu0 %v3536_v18  ;;  %v3600_v61 = vld [vmem:[#allocation7 + $0x48] sm:$0xff]  ;;  %v3626_v57 = vld [vmem:[#allocation7 + $0x40] sm:$0xff] }
  0xf2   :  { %v1012_v45 = vpop.permute.xlu1 %1011  ;;  %v956_v58 = vadd.f32 %v2191_v20, %v652_v5  ;;  %v955_v52 = vadd.f32 %v3464_v23, %v651_v55  ;;  %v2256_v7 = vsel %vm1069_vm0, 1.0, %v2796_v36  ;;  %v3561_v8 = vsel %vm467_vm14, 1.0, %v2796_v36  ;;  %2495 = vmatpush3.msra.mxu0 %v3536_v18  ;;  %2546 = vmatprep.subr.mxu1 %v1689_v10 }
  0xf3   :  { %vm1063_vm8 = vcmp.eq.s32.totalorder %v2944_v27, %v1012_v45  ;;  %vm1064_vm9 = vcmp.eq.s32.totalorder %v2948_v29, %v1012_v45  ;;  %vm1065_vm10 = vcmp.eq.s32.totalorder %v2957_v33, %v1012_v45  ;;  %vm1066_vm11 = vcmp.eq.s32.totalorder %v2951_v31, %v1012_v45  ;;  %1041 = vperm.xlu1 %2634, %v2924_v21  }
  0xf4   :  { %v2251_v12 = vsel %vm1064_vm9, 1.0, %v2796_v36  ;;  %v2253_v56 = vsel %vm1066_vm11, 1.0, %v2796_v36  ;;  %v2250_v53 = vsel %vm1063_vm8, 1.0, %v2796_v36  ;;  %v2252_v16 = vsel %vm1065_vm10, 1.0, %v2796_v36  ;;  %2496 = vmatprep.subr.mxu0 %v3548_v15  ;;  %2562 = vmatpush3.msra.mxu1 %v1689_v10 }
  0xf5   :  { %v1256_v28 = vadd.f32 %v2251_v12, %v952_v46  ;;  %v1258_v35 = vadd.f32 %v2253_v56, %v954_v49  ;;  %v951_v21 = vadd.f32 %v2186_v0, %v3438_v9  ;;  %v1257_v4 = vadd.f32 %v2252_v16, %v953_v1  ;;  %2497 = vmatpush3.msra.mxu0 %v3548_v15  ;;  %v3643_v56 = vld [vmem:[#allocation7 + $0x38] sm:$0xff] }
  0xf6   :  { %v958_v43 = vadd.f32 %v2193_v47, %v654_v24  ;;  %v1260_v40 = vadd.f32 %v2255_v3, %v956_v58  ;;  %v957_v59 = vadd.f32 %v2192_v2, %v653_v42  ;;  %v1259_v14 = vadd.f32 %v2254_v44, %v955_v52  ;;  %2498 = vmatprep.subr.mxu0 %v3568_v32  ;;  %v3666_v58 = vld [vmem:[#allocation7 + $0x30] sm:$0xff] }
  0xf7   :  { %v3509_v22 = vpop.permute.xlu1 %105  ;;  %1459 = vmatprep.mubr.f32.mxu0 %v1256_v28  ;;  %1604 = vmatprep.mubr.f32.mxu1 %v1258_v35  ;;  %v1255_v38 = vadd.f32 %v2250_v53, %v951_v21  ;;  %vm167_vm15 = vcmp.eq.s32.totalorder %v2944_v27, %v3168_v63  ;;  %vm168_vm0 = vcmp.eq.s32.totalorder %v2948_v29, %v3168_v63  ;;  %v3632_v42 = vsel %vm468_vm1, 1.0, %v2796_v36 }
  0xf8   :  { %1605 = vmatmul.mubr.f32.gmra.mxu1 %v1257_v4  ;;  %v1262_v6 = vadd.f32 %v2257_v17, %v958_v43  ;;  %v1261_v13 = vadd.f32 %v2256_v7, %v957_v59  ;;  %vm159_vm4 = vcmp.eq.s32.totalorder %v2944_v27, %v3509_v22  ;;  %vm160_vm7 = vcmp.eq.s32.totalorder %v2948_v29, %v3509_v22 }
  0xf9   :  { %1460 = vmatmul.mubr.f32.gmra.mxu0 %v1255_v38  ;;  %vm161_vm8 = vcmp.eq.s32.totalorder %v2957_v33, %v3509_v22  ;;  %vm162_vm11 = vcmp.eq.s32.totalorder %v2951_v31, %v3509_v22  ;;  %vm169_vm14 = vcmp.eq.s32.totalorder %v2957_v33, %v3168_v63  ;;  %v2066_v25 = vsel %vm159_vm4, 1.0, %v2796_v36  ;;  %2547 = vmatprep.subr.mxu1 %v3536_v18 }
  0xfa   :  { %1464 = vmatprep.mubr.f32.mxu0 %v1260_v40  ;;  %1609 = vmatprep.mubr.f32.mxu1 %v1262_v6  ;;  %v2067_v20 = vsel %vm160_vm7, 1.0, %v2796_v36  ;;  %v2068_v47 = vsel %vm161_vm8, 1.0, %v2796_v36  ;;  %v2069_v0 = vsel %vm162_vm11, 1.0, %v2796_v36  ;;  %vm170_vm4 = vcmp.eq.s32.totalorder %v2951_v31, %v3168_v63  ;;  %v3717_v6 = vpop.permute.xlu0 %1023 }
  0xfb   :  { %2499 = vmatpush3.msra.mxu0 %v3568_v32  ;;  %vm4341_vm1 = vcmp.eq.s32.totalorder %v2957_v33, %v3024_v50  ;;  %2563 = vmatpush3.msra.mxu1 %v3536_v18  ;;  %v3685_v3 = vsel %vm167_vm15, 1.0, %v2796_v36  ;;  %v2075_v43 = vsel %vm168_vm0, 1.0, %v2796_v36  ;;  %v3695_v40 = vsel %vm169_vm14, 1.0, %v2796_v36  ;;  %v3750_v18 = vld [vmem:[#allocation7 + $0x28] sm:$0xff] }
  0xfc   :  { %v410_v9 = vpop.permute.xlu1 %409  ;;  %1610 = vmatmul.mubr.f32.gmra.mxu1 %v1261_v13  ;;  %2500 = vmatprep.subr.mxu0 %v3600_v61  ;;  %v3649_v53 = vsel %vm4341_vm1, 1.0, %v2796_v36  ;;  %v2077_v17 = vsel %vm170_vm4, 1.0, %v2796_v36  ;;  %vm777_vm15 = vcmp.eq.s32.totalorder %v2957_v33, %v3421_v62  ;;  %vm778_vm0 = vcmp.eq.s32.totalorder %v2951_v31, %v3421_v62 }
  0xfd   :  { %1465 = vmatmul.mubr.f32.gmra.mxu0 %v1259_v14  ;;  %vm464_vm5 = vcmp.eq.s32.totalorder %v2948_v29, %v410_v9  ;;  %vm466_vm6 = vcmp.eq.s32.totalorder %v2951_v31, %v410_v9  ;;  %vm463_vm9 = vcmp.eq.s32.totalorder %v2944_v27, %v410_v9  ;;  %vm465_vm10 = vcmp.eq.s32.totalorder %v2957_v33, %v410_v9 }
  0xfe   :  { %v2131_v23 = vsel %vm464_vm5, 1.0, %v2796_v36  ;;  %v2133_v48 = vsel %vm466_vm6, 1.0, %v2796_v36  ;;  %v2130_v26 = vsel %vm463_vm9, 1.0, %v2796_v36  ;;  %v2132_v30 = vsel %vm465_vm10, 1.0, %v2796_v36  ;;  %2501 = vmatpush3.msra.mxu0 %v3600_v61  ;;  %2548 = vmatprep.subr.mxu1 %v3548_v15 }
  0xff   :  { %v656_v19 = vadd.f32 %v2131_v23, %v2067_v20  ;;  %v658_v54 = vadd.f32 %v2133_v48, %v2069_v0  ;;  %v655_v46 = vadd.f32 %v2130_v26, %v2066_v25  ;;  %v657_v12 = vadd.f32 %v2132_v30, %v2068_v47  ;;  %2502 = vmatprep.subr.mxu0 %v3626_v57 }
 0x100   :  { %vm4342_vm6 = vcmp.eq.s32.totalorder %v2951_v31, %v3024_v50  ;;  %2503 = vmatpush3.msra.mxu0 %v3626_v57  ;;  %2564 = vmatpush3.msra.mxu1 %v3548_v15  ;;  %v3743_v14 = vsel %vm777_vm15, 1.0, %v2796_v36  ;;  %vm1080_vm1 = vcmp.eq.s32.totalorder %v2948_v29, %v3717_v6  ;;  %v2205_v15 = vsel %vm778_vm0, 1.0, %v2796_v36 }
 0x101   :  { %v714_v34 = vpop.permute.xlu1 %713  ;;  %v2137_v22 = vsel %vm4342_vm6, 1.0, %v2796_v36  ;;  %2504 = vmatprep.subr.mxu0 %v3643_v56  ;;  %2549 = vmatprep.subr.mxu1 %v3568_v32  ;;  %vm1079_vm6 = vcmp.eq.s32.totalorder %v2944_v27, %v3717_v6 }
 0x102   :  { %vm768_vm12 = vcmp.eq.s32.totalorder %v2948_v29, %v714_v34  ;;  %vm770_vm13 = vcmp.eq.s32.totalorder %v2951_v31, %v714_v34  ;;  %vm767_vm3 = vcmp.eq.s32.totalorder %v2944_v27, %v714_v34  ;;  %vm769_vm2 = vcmp.eq.s32.totalorder %v2957_v33, %v714_v34  ;;  %2505 = vmatpush3.msra.mxu0 %v3643_v56  ;;  %v3752_v34 = vld [vmem:[#allocation7 + $0x20] sm:$0xff] }
 0x103   :  { %v2195_v39 = vsel %vm768_vm12, 1.0, %v2796_v36  ;;  %v2197_v41 = vsel %vm770_vm13, 1.0, %v2796_v36  ;;  %v2194_v55 = vsel %vm767_vm3, 1.0, %v2796_v36  ;;  %v2196_v5 = vsel %vm769_vm2, 1.0, %v2796_v36  ;;  %2506 = vmatprep.subr.mxu0 %v3666_v58  ;;  %2565 = vmatpush3.msra.mxu1 %v3568_v32 }
 0x104   :  { %vm775_vm2 = vcmp.eq.s32.totalorder %v2944_v27, %v3421_v62  ;;  %vm776_vm3 = vcmp.eq.s32.totalorder %v2948_v29, %v3421_v62  ;;  %v960_v49 = vadd.f32 %v2195_v39, %v656_v19  ;;  %v962_v24 = vadd.f32 %v2197_v41, %v658_v54  ;;  %2507 = vmatpush3.msra.mxu0 %v3666_v58  ;;  %v3793_v41 = vld [vmem:[#allocation7 + $0x10] sm:$0xff] }
 0x105   :  { %v959_v28 = vadd.f32 %v2194_v55, %v655_v46  ;;  %v961_v35 = vadd.f32 %v2196_v5, %v657_v12  ;;  %v3711_v52 = vsel %vm775_vm2, 1.0, %v2796_v36  ;;  %v2203_v59 = vsel %vm776_vm3, 1.0, %v2796_v36  ;;  %2508 = vmatprep.subr.mxu0 %v3750_v18  ;;  %2550 = vmatprep.subr.mxu1 %v3600_v61 }
 0x106   :  { %v3616_v45 = vpop.permute.xlu1 %108  ;;  %2509 = vmatpush3.msra.mxu0 %v3750_v18  ;;  %2566 = vmatpush3.msra.mxu1 %v3600_v61  ;;  %v3791_v61 = vld [vmem:[#allocation7 + $0x18] sm:$0xff]  ;;  %v2267_v55 = vsel %vm1080_vm1, 1.0, %v2796_v36 }
 0x107   :  { %vm163_vm5 = vcmp.eq.s32.totalorder %v2944_v27, %v3616_v45  ;;  %vm164_vm7 = vcmp.eq.s32.totalorder %v2948_v29, %v3616_v45  ;;  %vm165_vm8 = vcmp.eq.s32.totalorder %v2957_v33, %v3616_v45  ;;  %vm166_vm9 = vcmp.eq.s32.totalorder %v2951_v31, %v3616_v45  ;;  %2510 = vmatprep.subr.mxu0 %v3752_v34 }
 0x108   :  { %v2070_v63 = vsel %vm163_vm5, 1.0, %v2796_v36  ;;  %v2071_v7 = vsel %vm164_vm7, 1.0, %v2796_v36  ;;  %v2072_v9 = vsel %vm165_vm8, 1.0, %v2796_v36  ;;  %v2073_v10 = vsel %vm166_vm9, 1.0, %v2796_v36  ;;  %2511 = vmatpush3.msra.mxu0 %v3752_v34  ;;  %2551 = vmatprep.subr.mxu1 %v3626_v57 }
 0x109   :  { %v659_v13 = vadd.f32 %v3561_v8, %v2070_v63  ;;  %vm1082_vm5 = vcmp.eq.s32.totalorder %v2951_v31, %v3717_v6  ;;  %v660_v23 = vadd.f32 %v3632_v42, %v2071_v7  ;;  %v661_v8 = vadd.f32 %v3649_v53, %v2072_v9  ;;  %2512 = vmatprep.subr.mxu0 %v3791_v61 }
 0x10a   :  { %v662_v48 = vadd.f32 %v2137_v22, %v2073_v10  ;;  %vm1081_vm7 = vcmp.eq.s32.totalorder %v2957_v33, %v3717_v6  ;;  %v2269_v12 = vsel %vm1082_vm5, 1.0, %v2796_v36  ;;  %2513 = vmatpush3.msra.mxu0 %v3791_v61  ;;  %2567 = vmatpush3.msra.mxu1 %v3626_v57  ;;  %v3851_v6 = vpop.permute.xlu0 %1032 }
 0x10b   :  { %v1018_v16 = vpop.permute.xlu1 %1017  ;;  %2514 = vmatprep.subr.mxu0 %v3793_v41  ;;  %2552 = vmatprep.subr.mxu1 %v3643_v56 }
 0x10c   :  { %vm1071_vm10 = vcmp.eq.s32.totalorder %v2944_v27, %v1018_v16  ;;  %vm1072_vm11 = vcmp.eq.s32.totalorder %v2948_v29, %v1018_v16  ;;  %vm1073_vm12 = vcmp.eq.s32.totalorder %v2957_v33, %v1018_v16  ;;  %vm1074_vm13 = vcmp.eq.s32.totalorder %v2951_v31, %v1018_v16  ;;  %2515 = vmatpush3.msra.mxu0 %v3793_v41 }
 0x10d   :  { %v2259_v50 = vsel %vm1072_vm11, 1.0, %v2796_v36  ;;  %v2261_v60 = vsel %vm1074_vm13, 1.0, %v2796_v36  ;;  %v2258_v21 = vsel %vm1071_vm10, 1.0, %v2796_v36  ;;  %v2260_v1 = vsel %vm1073_vm12, 1.0, %v2796_v36  ;;  %2568 = vmatpush3.msra.mxu1 %v3643_v56  ;;  %v3835_v56 = vld [vmem:[#allocation7] sm:$0xff] }
 0x10e   :  { %v1264_v51 = vadd.f32 %v2259_v50, %v960_v49  ;;  %v1266_v2 = vadd.f32 %v2261_v60, %v962_v24  ;;  %v1263_v38 = vadd.f32 %v2258_v21, %v959_v28  ;;  %v1265_v4 = vadd.f32 %v2260_v1, %v961_v35  ;;  %v3806_v49 = vld [vmem:[#allocation7 + $0x8] sm:$0xff]  ;;  %2553 = vmatprep.subr.mxu1 %v3666_v58 }
 0x10f   :  { %2516 = vmatprep.subr.mxu0 %v3806_v49  ;;  %2569 = vmatpush3.msra.mxu1 %v3666_v58 }
 0x110   :  { %1469 = vmatprep.mubr.f32.mxu0 %v1264_v51  ;;  %1614 = vmatprep.mubr.f32.mxu1 %v1266_v2  ;;  %v717_v44 = vpop.permute.xlu1 %716 }
 0x111   :  { %1470 = vmatmul.mubr.f32.gmra.mxu0 %v1263_v38  ;;  %vm771_vm14 = vcmp.eq.s32.totalorder %v2944_v27, %v717_v44  ;;  %vm772_vm4 = vcmp.eq.s32.totalorder %v2948_v29, %v717_v44  ;;  %vm773_vm2 = vcmp.eq.s32.totalorder %v2957_v33, %v717_v44  ;;  %vm774_vm3 = vcmp.eq.s32.totalorder %v2951_v31, %v717_v44 }
 0x112   :  { %1615 = vmatmul.mubr.f32.gmra.mxu1 %v1265_v4  ;;  %v2198_v32 = vsel %vm771_vm14, 1.0, %v2796_v36  ;;  %v2199_v62 = vsel %vm772_vm4, 1.0, %v2796_v36  ;;  %v2200_v25 = vsel %vm773_vm2, 1.0, %v2796_v36  ;;  %v2201_v20 = vsel %vm774_vm3, 1.0, %v2796_v36  ;;  %2517 = vmatpush3.msra.mxu0 %v3806_v49 }
 0x113   :  { %v964_v54 = vadd.f32 %v2199_v62, %v660_v23  ;;  %v966_v5 = vadd.f32 %v2201_v20, %v662_v48  ;;  %v963_v42 = vadd.f32 %v2198_v32, %v659_v13  ;;  %v965_v46 = vadd.f32 %v2200_v25, %v661_v8  ;;  %2518 = vmatprep.subr.mxu0 %v3835_v56  ;;  %v422_v32 = vpop.permute.xlu0 %421 }
 0x114   :  { %2519 = vmatpush3.msra.mxu0 %v3835_v56  ;;  %vm179_vm14 = vcmp.eq.s32.totalorder %v2944_v27, %v3204_v11  ;;  %vm180_vm4 = vcmp.eq.s32.totalorder %v2948_v29, %v3204_v11  ;;  %vm181_vm2 = vcmp.eq.s32.totalorder %v2957_v33, %v3204_v11  ;;  %vm182_vm3 = vcmp.eq.s32.totalorder %v2951_v31, %v3204_v11 }
 0x115   :  { %v416_v26 = vpop.permute.xlu1 %415  ;;  %2554 = vmatprep.subr.mxu1 %v3750_v18  ;;  %v3855_v58 = vsel %vm179_vm14, 1.0, %v2796_v36  ;;  %v3858_v7 = vsel %vm180_vm4, 1.0, %v2796_v36  ;;  %v3861_v9 = vsel %vm181_vm2, 1.0, %v2796_v36  ;;  %v3864_v10 = vsel %vm182_vm3, 1.0, %v2796_v36 }
 0x116   :  { %vm471_vm8 = vcmp.eq.s32.totalorder %v2944_v27, %v416_v26  ;;  %vm472_vm9 = vcmp.eq.s32.totalorder %v2948_v29, %v416_v26  ;;  %vm473_vm10 = vcmp.eq.s32.totalorder %v2957_v33, %v416_v26  ;;  %vm474_vm11 = vcmp.eq.s32.totalorder %v2951_v31, %v416_v26  ;;  %2570 = vmatpush3.msra.mxu1 %v3750_v18 }
 0x117   :  { %v2138_v30 = vsel %vm471_vm8, 1.0, %v2796_v36  ;;  %v2139_v47 = vsel %vm472_vm9, 1.0, %v2796_v36  ;;  %v2140_v0 = vsel %vm473_vm10, 1.0, %v2796_v36  ;;  %v2141_v39 = vsel %vm474_vm11, 1.0, %v2796_v36  ;;  %2555 = vmatprep.subr.mxu1 %v3752_v34 }
 0x118   :  { %v664_v45 = vadd.f32 %v2139_v47, %v2075_v43  ;;  %v666_v19 = vadd.f32 %v2141_v39, %v2077_v17  ;;  %v663_v24 = vadd.f32 %v2138_v30, %v3685_v3  ;;  %v665_v53 = vadd.f32 %v2140_v0, %v3695_v40  ;;  %2571 = vmatpush3.msra.mxu1 %v3752_v34 }
 0x119   :  { %v2266_v43 = vsel %vm1079_vm6, 1.0, %v2796_v36  ;;  %2556 = vmatprep.subr.mxu1 %v3791_v61  ;;  %vm789_vm2 = vcmp.eq.s32.totalorder %v2957_v33, %v3454_v37  ;;  %vm790_vm3 = vcmp.eq.s32.totalorder %v2951_v31, %v3454_v37 }
 0x11a   :  { %v1021_v28 = vpop.permute.xlu1 %1020  ;;  %v968_v35 = vadd.f32 %v2203_v59, %v664_v45  ;;  %v970_v22 = vadd.f32 %v2205_v15, %v666_v19  ;;  %v967_v38 = vadd.f32 %v3711_v52, %v663_v24  ;;  %v969_v40 = vadd.f32 %v3743_v14, %v665_v53  ;;  %2572 = vmatpush3.msra.mxu1 %v3791_v61 }
 0x11b   :  { %vm1075_vm12 = vcmp.eq.s32.totalorder %v2944_v27, %v1021_v28  ;;  %vm1076_vm13 = vcmp.eq.s32.totalorder %v2948_v29, %v1021_v28  ;;  %vm1077_vm15 = vcmp.eq.s32.totalorder %v2957_v33, %v1021_v28  ;;  %vm1078_vm0 = vcmp.eq.s32.totalorder %v2951_v31, %v1021_v28  ;;  %2557 = vmatprep.subr.mxu1 %v3793_v41 }
 0x11c   :  { %v2263_v57 = vsel %vm1076_vm13, 1.0, %v2796_v36  ;;  %v2265_v16 = vsel %vm1078_vm0, 1.0, %v2796_v36  ;;  %v2262_v50 = vsel %vm1075_vm12, 1.0, %v2796_v36  ;;  %v2264_v60 = vsel %vm1077_vm15, 1.0, %v2796_v36  ;;  %2573 = vmatpush3.msra.mxu1 %v3793_v41 }
 0x11d   :  { %v1268_v21 = vadd.f32 %v2263_v57, %v964_v54  ;;  %v1270_v1 = vadd.f32 %v2265_v16, %v966_v5  ;;  %v1267_v51 = vadd.f32 %v2262_v50, %v963_v42  ;;  %v1269_v2 = vadd.f32 %v2264_v60, %v965_v46  ;;  %2558 = vmatprep.subr.mxu1 %v3806_v49 }
 0x11e   :  { %v1272_v3 = vadd.f32 %v2267_v55, %v968_v35  ;;  %v1274_v17 = vadd.f32 %v2269_v12, %v970_v22  ;;  %v2268_v52 = vsel %vm1081_vm7, 1.0, %v2796_v36  ;;  %v1271_v63 = vadd.f32 %v2266_v43, %v967_v38  ;;  %2574 = vmatpush3.msra.mxu1 %v3806_v49 }
 0x11f   :  { %1474 = vmatprep.mubr.f32.mxu0 %v1268_v21  ;;  %1619 = vmatprep.mubr.f32.mxu1 %v1270_v1  ;;  %v115_v4 = vpop.permute.xlu1 %114  ;;  %v1273_v44 = vadd.f32 %v2268_v52, %v969_v40  ;;  %vm787_vm12 = vcmp.eq.s32.totalorder %v2944_v27, %v3454_v37  ;;  %vm788_vm13 = vcmp.eq.s32.totalorder %v2948_v29, %v3454_v37 }
 0x120   :  { %1475 = vmatmul.mubr.f32.gmra.mxu0 %v1267_v51  ;;  %1620 = vmatmul.mubr.f32.gmra.mxu1 %v1269_v2  ;;  %vm171_vm8 = vcmp.eq.s32.totalorder %v2944_v27, %v115_v4  ;;  %vm172_vm9 = vcmp.eq.s32.totalorder %v2948_v29, %v115_v4  ;;  %vm173_vm10 = vcmp.eq.s32.totalorder %v2957_v33, %v115_v4  ;;  %v2214_v35 = vsel %vm787_vm12, 1.0, %v2796_v36 }
 0x121   :  { %1479 = vmatprep.mubr.f32.mxu0 %v1272_v3  ;;  %1624 = vmatprep.mubr.f32.mxu1 %v1274_v17  ;;  %vm174_vm11 = vcmp.eq.s32.totalorder %v2951_v31, %v115_v4  ;;  %v2078_v15 = vsel %vm171_vm8, 1.0, %v2796_v36  ;;  %v2079_v23 = vsel %vm172_vm9, 1.0, %v2796_v36  ;;  %v2080_v8 = vsel %vm173_vm10, 1.0, %v2796_v36 }
 0x122   :  { %v2081_v48 = vsel %vm174_vm11, 1.0, %v2796_v36  ;;  %2559 = vmatprep.subr.mxu1 %v3835_v56  ;;  %v2215_v22 = vsel %vm788_vm13, 1.0, %v2796_v36  ;;  %v2216_v4 = vsel %vm789_vm2, 1.0, %v2796_v36  ;;  %v2217_v3 = vsel %vm790_vm3, 1.0, %v2796_v36 }
 0x123   :  { %2575 = vmatpush3.msra.mxu1 %v3835_v56  ;;  %vm1093_vm2 = vcmp.eq.s32.totalorder %v2957_v33, %v3851_v6 }
 0x124   :  { %1480 = vmatmul.mubr.f32.gmra.mxu0 %v1271_v63  ;;  %v419_v59 = vpop.permute.xlu1 %418  ;;  %1625 = vmatmul.mubr.f32.gmra.mxu1 %v1273_v44 }
 0x125   :  { %vm475_vm1 = vcmp.eq.s32.totalorder %v2944_v27, %v419_v59  ;;  %vm476_vm5 = vcmp.eq.s32.totalorder %v2948_v29, %v419_v59  ;;  %vm477_vm6 = vcmp.eq.s32.totalorder %v2957_v33, %v419_v59  ;;  %vm478_vm7 = vcmp.eq.s32.totalorder %v2951_v31, %v419_v59 }
 0x126   :  { %v2142_v14 = vsel %vm475_vm1, 1.0, %v2796_v36  ;;  %v2143_v13 = vsel %vm476_vm5, 1.0, %v2796_v36  ;;  %v2144_v18 = vsel %vm477_vm6, 1.0, %v2796_v36  ;;  %v2145_v34 = vsel %vm478_vm7, 1.0, %v2796_v36 }
 0x127   :  { %v667_v47 = vadd.f32 %v2142_v14, %v2078_v15  ;;  %v668_v0 = vadd.f32 %v2143_v13, %v2079_v23  ;;  %v669_v39 = vadd.f32 %v2144_v18, %v2080_v8  ;;  %v670_v61 = vadd.f32 %v2145_v34, %v2081_v48 }
 0x128   :  { %vm479_vm1 = vcmp.eq.s32.totalorder %v2944_v27, %v422_v32  ;;  %vm480_vm5 = vcmp.eq.s32.totalorder %v2948_v29, %v422_v32  ;;  %vm481_vm6 = vcmp.eq.s32.totalorder %v2957_v33, %v422_v32  ;;  %vm482_vm7 = vcmp.eq.s32.totalorder %v2951_v31, %v422_v32 }
 0x129   :  { %v723_v11 = vpop.permute.xlu1 %722  ;;  %v2146_v57 = vsel %vm479_vm1, 1.0, %v2796_v36  ;;  %v2147_v16 = vsel %vm480_vm5, 1.0, %v2796_v36  ;;  %v2148_v50 = vsel %vm481_vm6, 1.0, %v2796_v36  ;;  %v2149_v60 = vsel %vm482_vm7, 1.0, %v2796_v36 }
 0x12a   :  { %vm779_vm15 = vcmp.eq.s32.totalorder %v2944_v27, %v723_v11  ;;  %vm780_vm0 = vcmp.eq.s32.totalorder %v2948_v29, %v723_v11  ;;  %vm781_vm14 = vcmp.eq.s32.totalorder %v2957_v33, %v723_v11  ;;  %vm782_vm4 = vcmp.eq.s32.totalorder %v2951_v31, %v723_v11 }
 0x12b   :  { %v2206_v25 = vsel %vm779_vm15, 1.0, %v2796_v36  ;;  %v2207_v20 = vsel %vm780_vm0, 1.0, %v2796_v36  ;;  %v2208_v26 = vsel %vm781_vm14, 1.0, %v2796_v36  ;;  %v2209_v30 = vsel %vm782_vm4, 1.0, %v2796_v36 }
 0x12c   :  { %v972_v41 = vadd.f32 %v2207_v20, %v668_v0  ;;  %v974_v45 = vadd.f32 %v2209_v30, %v670_v61  ;;  %v971_v19 = vadd.f32 %v2206_v25, %v667_v47  ;;  %v973_v54 = vadd.f32 %v2208_v26, %v669_v39 }
 0x12d   :  { %vm1091_vm6 = vcmp.eq.s32.totalorder %v2944_v27, %v3851_v6 }
 0x12e   :  { %v118_v62 = vpop.permute.xlu1 %117 }
 0x12f   :  { %vm175_vm8 = vcmp.eq.s32.totalorder %v2944_v27, %v118_v62  ;;  %vm176_vm9 = vcmp.eq.s32.totalorder %v2948_v29, %v118_v62  ;;  %vm177_vm10 = vcmp.eq.s32.totalorder %v2957_v33, %v118_v62  ;;  %vm178_vm11 = vcmp.eq.s32.totalorder %v2951_v31, %v118_v62 }
 0x130   :  { %v2082_v1 = vsel %vm175_vm8, 1.0, %v2796_v36  ;;  %v2083_v51 = vsel %vm176_vm9, 1.0, %v2796_v36  ;;  %v2084_v2 = vsel %vm177_vm10, 1.0, %v2796_v36  ;;  %v2085_v38 = vsel %vm178_vm11, 1.0, %v2796_v36 }
 0x131   :  { %v671_v17 = vadd.f32 %v2146_v57, %v2082_v1  ;;  %v672_v52 = vadd.f32 %v2147_v16, %v2083_v51  ;;  %v673_v37 = vadd.f32 %v2148_v50, %v2084_v2  ;;  %v674_v56 = vadd.f32 %v2149_v60, %v2085_v38 }
 0x133   :  { %v1027_v55 = vpop.permute.xlu1 %1026 }
 0x134   :  { %vm1083_vm15 = vcmp.eq.s32.totalorder %v2944_v27, %v1027_v55  ;;  %vm1084_vm0 = vcmp.eq.s32.totalorder %v2948_v29, %v1027_v55  ;;  %vm1085_vm14 = vcmp.eq.s32.totalorder %v2957_v33, %v1027_v55  ;;  %vm1086_vm4 = vcmp.eq.s32.totalorder %v2951_v31, %v1027_v55 }
 0x135   :  { %v2271_v5 = vsel %vm1084_vm0, 1.0, %v2796_v36  ;;  %v2273_v42 = vsel %vm1086_vm4, 1.0, %v2796_v36  ;;  %v2270_v46 = vsel %vm1083_vm15, 1.0, %v2796_v36  ;;  %v2272_v12 = vsel %vm1085_vm14, 1.0, %v2796_v36 }
 0x136   :  { %v1276_v49 = vadd.f32 %v2271_v5, %v972_v41  ;;  %v1278_v24 = vadd.f32 %v2273_v42, %v974_v45  ;;  %v1275_v53 = vadd.f32 %v2270_v46, %v971_v19  ;;  %v1277_v28 = vadd.f32 %v2272_v12, %v973_v54 }
 0x137   :  { %vm1092_vm0 = vcmp.eq.s32.totalorder %v2948_v29, %v3851_v6  ;;  %vm1094_vm15 = vcmp.eq.s32.totalorder %v2951_v31, %v3851_v6  ;;  %v2278_v5 = vsel %vm1091_vm6, 1.0, %v2796_v36  ;;  %v2280_v42 = vsel %vm1093_vm2, 1.0, %v2796_v36 }
 0x138   :  { %1484 = vmatprep.mubr.f32.mxu0 %v1276_v49  ;;  %1629 = vmatprep.mubr.f32.mxu1 %v1278_v24  ;;  %v726_v21 = vpop.permute.xlu1 %725  ;;  %v2279_v43 = vsel %vm1092_vm0, 1.0, %v2796_v36  ;;  %v2281_v40 = vsel %vm1094_vm15, 1.0, %v2796_v36 }
 0x139   :  { %1485 = vmatmul.mubr.f32.gmra.mxu0 %v1275_v53  ;;  %vm783_vm12 = vcmp.eq.s32.totalorder %v2944_v27, %v726_v21  ;;  %vm784_vm13 = vcmp.eq.s32.totalorder %v2948_v29, %v726_v21  ;;  %vm785_vm1 = vcmp.eq.s32.totalorder %v2957_v33, %v726_v21  ;;  %vm786_vm5 = vcmp.eq.s32.totalorder %v2951_v31, %v726_v21 }
 0x13a   :  { %1630 = vmatmul.mubr.f32.gmra.mxu1 %v1277_v28  ;;  %v2210_v63 = vsel %vm783_vm12, 1.0, %v2796_v36  ;;  %v2211_v44 = vsel %vm784_vm13, 1.0, %v2796_v36  ;;  %v2212_v59 = vsel %vm785_vm1, 1.0, %v2796_v36  ;;  %v2213_v11 = vsel %vm786_vm5, 1.0, %v2796_v36 }
 0x13b   :  { %v976_v62 = vadd.f32 %v2211_v44, %v672_v52  ;;  %v978_v25 = vadd.f32 %v2213_v11, %v674_v56  ;;  %v975_v20 = vadd.f32 %v2210_v63, %v671_v17  ;;  %v977_v26 = vadd.f32 %v2212_v59, %v673_v37 }
 0x13d   :  { %v425_v14 = vpop.permute.xlu1 %424 }
 0x13e   :  { %vm483_vm3 = vcmp.eq.s32.totalorder %v2944_v27, %v425_v14  ;;  %vm484_vm7 = vcmp.eq.s32.totalorder %v2948_v29, %v425_v14  ;;  %vm485_vm8 = vcmp.eq.s32.totalorder %v2957_v33, %v425_v14  ;;  %vm486_vm9 = vcmp.eq.s32.totalorder %v2951_v31, %v425_v14 }
 0x13f   :  { %v2150_v13 = vsel %vm483_vm3, 1.0, %v2796_v36  ;;  %v2151_v18 = vsel %vm484_vm7, 1.0, %v2796_v36  ;;  %v2152_v34 = vsel %vm485_vm8, 1.0, %v2796_v36  ;;  %v2153_v15 = vsel %vm486_vm9, 1.0, %v2796_v36 }
 0x140   :  { %v675_v23 = vadd.f32 %v2150_v13, %v3855_v58  ;;  %v676_v8 = vadd.f32 %v2151_v18, %v3858_v7  ;;  %v677_v48 = vadd.f32 %v2152_v34, %v3861_v9  ;;  %v678_v32 = vadd.f32 %v2153_v15, %v3864_v10 }
 0x142   :  { %v1030_v30 = vpop.permute.xlu1 %1029  ;;  %v980_v47 = vadd.f32 %v2215_v22, %v676_v8  ;;  %v982_v0 = vadd.f32 %v2217_v3, %v678_v32  ;;  %v979_v39 = vadd.f32 %v2214_v35, %v675_v23  ;;  %v981_v61 = vadd.f32 %v2216_v4, %v677_v48  ;;  %v4039_v35 = vpop.permute.xlu0 %430 }
 0x143   :  { %vm1087_vm10 = vcmp.eq.s32.totalorder %v2944_v27, %v1030_v30  ;;  %vm1088_vm11 = vcmp.eq.s32.totalorder %v2948_v29, %v1030_v30  ;;  %vm1089_vm14 = vcmp.eq.s32.totalorder %v2957_v33, %v1030_v30  ;;  %vm1090_vm4 = vcmp.eq.s32.totalorder %v2951_v31, %v1030_v30 }
 0x144   :  { %v2275_v58 = vsel %vm1088_vm11, 1.0, %v2796_v36  ;;  %v2277_v7 = vsel %vm1090_vm4, 1.0, %v2796_v36  ;;  %v2274_v9 = vsel %vm1087_vm10, 1.0, %v2796_v36  ;;  %v2276_v10 = vsel %vm1089_vm14, 1.0, %v2796_v36 }
 0x145   :  { %v1280_v41 = vadd.f32 %v2275_v58, %v976_v62  ;;  %v1282_v45 = vadd.f32 %v2277_v7, %v978_v25  ;;  %v1279_v19 = vadd.f32 %v2274_v9, %v975_v20  ;;  %v1281_v54 = vadd.f32 %v2276_v10, %v977_v26 }
 0x146   :  { %v1284_v55 = vadd.f32 %v2279_v43, %v980_v47  ;;  %v1286_v12 = vadd.f32 %v2281_v40, %v982_v0  ;;  %v1283_v49 = vadd.f32 %v2278_v5, %v979_v39  ;;  %v1285_v24 = vadd.f32 %v2280_v42, %v981_v61  ;;  %v130_v37 = vpop.permute.xlu0 %129 }
 0x147   :  { %1489 = vmatprep.mubr.f32.mxu0 %v1280_v41  ;;  %1634 = vmatprep.mubr.f32.mxu1 %v1282_v45  ;;  %v124_v46 = vpop.permute.xlu1 %123  ;;  %vm491_vm10 = vcmp.eq.s32.totalorder %v2944_v27, %v4039_v35  ;;  %vm492_vm11 = vcmp.eq.s32.totalorder %v2948_v29, %v4039_v35  ;;  %vm493_vm14 = vcmp.eq.s32.totalorder %v2957_v33, %v4039_v35 }
 0x148   :  { %1490 = vmatmul.mubr.f32.gmra.mxu0 %v1279_v19  ;;  %1635 = vmatmul.mubr.f32.gmra.mxu1 %v1281_v54  ;;  %vm183_vm1 = vcmp.eq.s32.totalorder %v2944_v27, %v124_v46  ;;  %vm184_vm5 = vcmp.eq.s32.totalorder %v2948_v29, %v124_v46  ;;  %vm185_vm6 = vcmp.eq.s32.totalorder %v2957_v33, %v124_v46  ;;  %v2158_v32 = vsel %vm491_vm10, 1.0, %v2796_v36 }
 0x149   :  { %1494 = vmatprep.mubr.f32.mxu0 %v1284_v55  ;;  %1639 = vmatprep.mubr.f32.mxu1 %v1286_v12  ;;  %vm186_vm2 = vcmp.eq.s32.totalorder %v2951_v31, %v124_v46  ;;  %vm494_vm4 = vcmp.eq.s32.totalorder %v2951_v31, %v4039_v35  ;;  %v2090_v60 = vsel %vm183_vm1, 1.0, %v2796_v36  ;;  %v2091_v21 = vsel %vm184_vm5, 1.0, %v2796_v36 }
 0x14a   :  { %v2092_v1 = vsel %vm185_vm6, 1.0, %v2796_v36  ;;  %v2093_v51 = vsel %vm186_vm2, 1.0, %v2796_v36  ;;  %v2159_v62 = vsel %vm492_vm11, 1.0, %v2796_v36  ;;  %v2160_v25 = vsel %vm493_vm14, 1.0, %v2796_v36  ;;  %v738_v61 = vpop.permute.xlu0 %737 }
 0x14b   :  { %v2161_v20 = vsel %vm494_vm4, 1.0, %v2796_v36 }
 0x14c   :  { %1495 = vmatmul.mubr.f32.gmra.mxu0 %v1283_v49  ;;  %1640 = vmatmul.mubr.f32.gmra.mxu1 %v1285_v24  ;;  %v428_v53 = vpop.permute.xlu1 %427 }
 0x14d   :  { %vm487_vm0 = vcmp.eq.s32.totalorder %v2944_v27, %v428_v53  ;;  %vm488_vm15 = vcmp.eq.s32.totalorder %v2948_v29, %v428_v53  ;;  %vm489_vm12 = vcmp.eq.s32.totalorder %v2957_v33, %v428_v53  ;;  %vm490_vm13 = vcmp.eq.s32.totalorder %v2951_v31, %v428_v53 }
 0x14e   :  { %v2154_v6 = vsel %vm487_vm0, 1.0, %v2796_v36  ;;  %v2155_v22 = vsel %vm488_vm15, 1.0, %v2796_v36  ;;  %v2156_v57 = vsel %vm489_vm12, 1.0, %v2796_v36  ;;  %v2157_v16 = vsel %vm490_vm13, 1.0, %v2796_v36 }
 0x14f   :  { %v679_v43 = vadd.f32 %v2154_v6, %v2090_v60  ;;  %v680_v40 = vadd.f32 %v2155_v22, %v2091_v21  ;;  %v681_v17 = vadd.f32 %v2156_v57, %v2092_v1  ;;  %v682_v52 = vadd.f32 %v2157_v16, %v2093_v51 }
 0x150   :  { %vm191_vm0 = vcmp.eq.s32.totalorder %v2944_v27, %v130_v37  ;;  %vm192_vm15 = vcmp.eq.s32.totalorder %v2948_v29, %v130_v37  ;;  %vm193_vm12 = vcmp.eq.s32.totalorder %v2957_v33, %v130_v37  ;;  %vm194_vm13 = vcmp.eq.s32.totalorder %v2951_v31, %v130_v37 }
 0x151   :  { %v732_v28 = vpop.permute.xlu1 %731  ;;  %v2098_v30 = vsel %vm191_vm0, 1.0, %v2796_v36  ;;  %v2099_v47 = vsel %vm192_vm15, 1.0, %v2796_v36  ;;  %v2100_v0 = vsel %vm193_vm12, 1.0, %v2796_v36  ;;  %v2101_v39 = vsel %vm194_vm13, 1.0, %v2796_v36 }
 0x152   :  { %vm791_vm3 = vcmp.eq.s32.totalorder %v2944_v27, %v732_v28  ;;  %vm792_vm7 = vcmp.eq.s32.totalorder %v2948_v29, %v732_v28  ;;  %vm793_vm8 = vcmp.eq.s32.totalorder %v2957_v33, %v732_v28  ;;  %vm794_vm9 = vcmp.eq.s32.totalorder %v2951_v31, %v732_v28 }
 0x153   :  { %v2218_v2 = vsel %vm791_vm3, 1.0, %v2796_v36  ;;  %v2219_v38 = vsel %vm792_vm7, 1.0, %v2796_v36  ;;  %v2220_v4 = vsel %vm793_vm8, 1.0, %v2796_v36  ;;  %v2221_v3 = vsel %vm794_vm9, 1.0, %v2796_v36 }
 0x154   :  { %v984_v63 = vadd.f32 %v2219_v38, %v680_v40  ;;  %v986_v44 = vadd.f32 %v2221_v3, %v682_v52  ;;  %v983_v59 = vadd.f32 %v2218_v2, %v679_v43  ;;  %v985_v11 = vadd.f32 %v2220_v4, %v681_v17 }
 0x155   :  { %vm799_vm0 = vcmp.eq.s32.totalorder %v2944_v27, %v738_v61  ;;  %vm800_vm15 = vcmp.eq.s32.totalorder %v2948_v29, %v738_v61  ;;  %vm801_vm12 = vcmp.eq.s32.totalorder %v2957_v33, %v738_v61  ;;  %vm802_vm13 = vcmp.eq.s32.totalorder %v2951_v31, %v738_v61 }
 0x156   :  { %v127_v50 = vpop.permute.xlu1 %126  ;;  %v2226_v35 = vsel %vm799_vm0, 1.0, %v2796_v36  ;;  %v2227_v6 = vsel %vm800_vm15, 1.0, %v2796_v36  ;;  %v2228_v22 = vsel %vm801_vm12, 1.0, %v2796_v36  ;;  %v2229_v57 = vsel %vm802_vm13, 1.0, %v2796_v36 }
 0x157   :  { %vm187_vm3 = vcmp.eq.s32.totalorder %v2944_v27, %v127_v50  ;;  %vm188_vm7 = vcmp.eq.s32.totalorder %v2948_v29, %v127_v50  ;;  %vm189_vm8 = vcmp.eq.s32.totalorder %v2957_v33, %v127_v50  ;;  %vm190_vm9 = vcmp.eq.s32.totalorder %v2951_v31, %v127_v50 }
 0x158   :  { %v2094_v58 = vsel %vm187_vm3, 1.0, %v2796_v36  ;;  %v2095_v7 = vsel %vm188_vm7, 1.0, %v2796_v36  ;;  %v2096_v9 = vsel %vm189_vm8, 1.0, %v2796_v36  ;;  %v2097_v10 = vsel %vm190_vm9, 1.0, %v2796_v36 }
 0x159   :  { %v683_v41 = vadd.f32 %v2158_v32, %v2094_v58  ;;  %v684_v45 = vadd.f32 %v2159_v62, %v2095_v7  ;;  %v685_v19 = vadd.f32 %v2160_v25, %v2096_v9  ;;  %v686_v54 = vadd.f32 %v2161_v20, %v2097_v10  ;;  %v4204_v32 = vld [vmem:[%s4337_s2] ss:$0 sm:$0xff] }
 0x15b   :  { %v1036_v56 = vpop.permute.xlu1 %1035 }
 0x15c   :  { %vm1095_vm1 = vcmp.eq.s32.totalorder %v2944_v27, %v1036_v56  ;;  %vm1096_vm5 = vcmp.eq.s32.totalorder %v2948_v29, %v1036_v56  ;;  %vm1097_vm6 = vcmp.eq.s32.totalorder %v2957_v33, %v1036_v56  ;;  %vm1098_vm2 = vcmp.eq.s32.totalorder %v2951_v31, %v1036_v56 }
 0x15d   :  { %v2283_v14 = vsel %vm1096_vm5, 1.0, %v2796_v36  ;;  %v2285_v13 = vsel %vm1098_vm2, 1.0, %v2796_v36  ;;  %v2282_v18 = vsel %vm1095_vm1, 1.0, %v2796_v36  ;;  %v2284_v34 = vsel %vm1097_vm6, 1.0, %v2796_v36 }
 0x15e   :  { %v1288_v15 = vadd.f32 %v2283_v14, %v984_v63  ;;  %v1290_v23 = vadd.f32 %v2285_v13, %v986_v44  ;;  %v1287_v8 = vadd.f32 %v2282_v18, %v983_v59  ;;  %v1289_v48 = vadd.f32 %v2284_v34, %v985_v11 }
 0x160   :  { %1499 = vmatprep.mubr.f32.mxu0 %v1288_v15  ;;  %1644 = vmatprep.mubr.f32.mxu1 %v1290_v23  ;;  %v735_v26 = vpop.permute.xlu1 %734 }
 0x161   :  { %1500 = vmatmul.mubr.f32.gmra.mxu0 %v1287_v8  ;;  %1645 = vmatmul.mubr.f32.gmra.mxu1 %v1289_v48  ;;  %vm795_vm10 = vcmp.eq.s32.totalorder %v2944_v27, %v735_v26  ;;  %vm796_vm11 = vcmp.eq.s32.totalorder %v2948_v29, %v735_v26  ;;  %vm797_vm14 = vcmp.eq.s32.totalorder %v2957_v33, %v735_v26 }
 0x162   :  { %vm798_vm4 = vcmp.eq.s32.totalorder %v2951_v31, %v735_v26  ;;  %v2222_v55 = vsel %vm795_vm10, 1.0, %v2796_v36  ;;  %v2223_v5 = vsel %vm796_vm11, 1.0, %v2796_v36  ;;  %v2224_v42 = vsel %vm797_vm14, 1.0, %v2796_v36 }
 0x163   :  { %v2225_v46 = vsel %vm798_vm4, 1.0, %v2796_v36  ;;  %v988_v16 = vadd.f32 %v2223_v5, %v684_v45  ;;  %v987_v60 = vadd.f32 %v2222_v55, %v683_v41  ;;  %v989_v21 = vadd.f32 %v2224_v42, %v685_v19 }
 0x164   :  { %v990_v50 = vadd.f32 %v2225_v46, %v686_v54 }
 0x165   :  { %v434_v12 = vpop.permute.xlu1 %433 }
 0x166   :  { %vm495_vm1 = vcmp.eq.s32.totalorder %v2944_v27, %v434_v12  ;;  %vm496_vm5 = vcmp.eq.s32.totalorder %v2948_v29, %v434_v12  ;;  %vm497_vm6 = vcmp.eq.s32.totalorder %v2957_v33, %v434_v12  ;;  %vm498_vm2 = vcmp.eq.s32.totalorder %v2951_v31, %v434_v12 }
 0x167   :  { %v2162_v49 = vsel %vm495_vm1, 1.0, %v2796_v36  ;;  %v2163_v24 = vsel %vm496_vm5, 1.0, %v2796_v36  ;;  %v2164_v53 = vsel %vm497_vm6, 1.0, %v2796_v36  ;;  %v2165_v28 = vsel %vm498_vm2, 1.0, %v2796_v36 }
 0x168   :  { %v687_v1 = vadd.f32 %v2162_v49, %v2098_v30  ;;  %v688_v51 = vadd.f32 %v2163_v24, %v2099_v47  ;;  %v689_v2 = vadd.f32 %v2164_v53, %v2100_v0  ;;  %v690_v38 = vadd.f32 %v2165_v28, %v2101_v39 }
 0x16a   :  { %v1039_v4 = vpop.permute.xlu1 %1038  ;;  %v992_v59 = vadd.f32 %v2227_v6, %v688_v51  ;;  %v994_v11 = vadd.f32 %v2229_v57, %v690_v38  ;;  %v991_v14 = vadd.f32 %v2226_v35, %v687_v1  ;;  %v993_v13 = vadd.f32 %v2228_v22, %v689_v2 }
 0x16b   :  { %vm1099_vm3 = vcmp.eq.s32.totalorder %v2944_v27, %v1039_v4  ;;  %vm1100_vm7 = vcmp.eq.s32.totalorder %v2948_v29, %v1039_v4  ;;  %vm1101_vm8 = vcmp.eq.s32.totalorder %v2957_v33, %v1039_v4  ;;  %vm1102_vm9 = vcmp.eq.s32.totalorder %v2951_v31, %v1039_v4 }
 0x16c   :  { %v2287_v3 = vsel %vm1100_vm7, 1.0, %v2796_v36  ;;  %v2289_v43 = vsel %vm1102_vm9, 1.0, %v2796_v36  ;;  %v2286_v40 = vsel %vm1099_vm3, 1.0, %v2796_v36  ;;  %v2288_v17 = vsel %vm1101_vm8, 1.0, %v2796_v36 }
 0x16d   :  { %v1292_v52 = vadd.f32 %v2287_v3, %v988_v16  ;;  %v1294_v37 = vadd.f32 %v2289_v43, %v990_v50  ;;  %v1291_v56 = vadd.f32 %v2286_v40, %v987_v60  ;;  %v1293_v63 = vadd.f32 %v2288_v17, %v989_v21 }
 0x16e   :  { %v1042_v44 = vpop.permute.xlu1 %1041 }
 0x16f   :  { %vm1103_vm10 = vcmp.eq.s32.totalorder %v2944_v27, %v1042_v44  ;;  %vm1104_vm11 = vcmp.eq.s32.totalorder %v2948_v29, %v1042_v44  ;;  %vm1105_vm14 = vcmp.eq.s32.totalorder %v2957_v33, %v1042_v44  ;;  %vm1106_vm4 = vcmp.eq.s32.totalorder %v2951_v31, %v1042_v44  ;;  %1504 = vmatprep.mubr.f32.mxu0 %v1292_v52 }
 0x170   :  { %1649 = vmatprep.mubr.f32.mxu1 %v1294_v37  ;;  %1505 = vmatmul.mubr.f32.gmra.mxu0 %v1291_v56  ;;  %v2291_v18 = vsel %vm1104_vm11, 1.0, %v2796_v36  ;;  %v2293_v34 = vsel %vm1106_vm4, 1.0, %v2796_v36  ;;  %v2290_v15 = vsel %vm1103_vm10, 1.0, %v2796_v36  ;;  %v2292_v23 = vsel %vm1105_vm14, 1.0, %v2796_v36 }
 0x171   :  { %1650 = vmatmul.mubr.f32.gmra.mxu1 %v1293_v63  ;;  %v1296_v8 = vadd.f32 %v2291_v18, %v992_v59  ;;  %v1298_v27 = vadd.f32 %v2293_v34, %v994_v11  ;;  %v1295_v48 = vadd.f32 %v2290_v15, %v991_v14  ;;  %v1297_v29 = vadd.f32 %v2292_v23, %v993_v13 }
 0x173   :  { %1509 = vmatprep.mubr.f32.mxu0 %v1296_v8  ;;  %1654 = vmatprep.mubr.f32.mxu1 %v1298_v27 }
 0x174   :  { %1510 = vmatmul.mubr.f32.gmra.mxu0 %v1295_v48 }
 0x175   :  { %1655 = vmatmul.mubr.f32.gmra.mxu1 %v1297_v29 }
 0x186   :  { %v2328_v31 = vpop.f32.mrf.mxu0 }
 0x187   :  { %v2408_v33 = vpop.f32.mrf.mxu1 }
 0x188   :  { %v2329_v62 = vpop.f32.mrf.mxu0 }
 0x189   :  { %v2409_v25 = vpop.f32.mrf.mxu1  ;;  %v2330_v20 = vadd.f32 %v2329_v62, %v2328_v31 }
 0x18a   :  { %v2331_v36 = vpop.f32.mrf.mxu0  ;;  %v2410_v47 = vadd.f32 %v2409_v25, %v2408_v33 }
 0x18b   :  { %v2411_v26 = vpop.f32.mrf.mxu1  ;;  %v1437_v30 = vadd.f32 %v2330_v20, %v4204_v32 }
 0x18c   :  { %v2332_v0 = vpop.f32.mrf.mxu0 }
 0x18d   :  { %v2412_v39 = vpop.f32.mrf.mxu1  ;;  %v1582_v61 = vadd.f32 %v2410_v47, %v1437_v30  ;;  %v2333_v58 = vadd.f32 %v2332_v0, %v2331_v36 }
 0x18e   :  { %v2413_v10 = vadd.f32 %v2412_v39, %v2411_v26 }
 0x18f   :  { %v1660_v7 = vmax.f32 %v1582_v61, 0.0  ;;  %v1442_v9 = vadd.f32 %v2333_v58, %v4204_v32 }
 0x191   :  { %v1587_v41 = vadd.f32 %v2413_v10, %v1442_v9  ;;  %2520 = vmatprep.mubr.f32.mxu0 %v1660_v7 }
 0x192   :  { %v2334_v19 = vpop.f32.mrf.mxu0 }
 0x193   :  { %v1661_v45 = vmax.f32 %v1587_v41, 0.0  ;;  %v2414_v54 = vpop.f32.mrf.mxu1 }
 0x194   :  { %v2335_v55 = vpop.f32.mrf.mxu0 }
 0x195   :  { %2521 = vmatmul.mubr.f32.vlgmr.msra.gmra.mxu0 %v1661_v45  ;;  %v2336_v5 = vadd.f32 %v2335_v55, %v2334_v19  ;;  %v2415_v42 = vpop.f32.mrf.mxu1 }
 0x196   :  { %v2416_v12 = vadd.f32 %v2415_v42, %v2414_v54 }
 0x197   :  { %v1447_v46 = vadd.f32 %v2336_v5, %v4204_v32 }
 0x199   :  { %v1592_v49 = vadd.f32 %v2416_v12, %v1447_v46 }
 0x19b   :  { %v1662_v24 = vmax.f32 %v1592_v49, 0.0 }
 0x19d   :  { %v2417_v28 = vpop.f32.mrf.mxu1  ;;  %2523 = vmatprep.mubr.f32.mxu0 %v1662_v24 }
 0x19f   :  { %v2337_v53 = vpop.f32.mrf.mxu0  ;;  %v2418_v6 = vpop.f32.mrf.mxu1 }
 0x1a0   :  { %v2419_v16 = vadd.f32 %v2418_v6, %v2417_v28 }
 0x1a1   :  { %v2338_v35 = vpop.f32.mrf.mxu0 }
 0x1a2   :  { %v2339_v22 = vadd.f32 %v2338_v35, %v2337_v53 }
 0x1a4   :  { %v1452_v57 = vadd.f32 %v2339_v22, %v4204_v32 }
 0x1a6   :  { %v1597_v50 = vadd.f32 %v2419_v16, %v1452_v57 }
 0x1a8   :  { %v1663_v60 = vmax.f32 %v1597_v50, 0.0 }
 0x1aa   :  { %2524 = vmatmul.mubr.f32.gmra.mxu0 %v1663_v60 }
 0x1ab   :  { %v2340_v21 = vpop.f32.mrf.mxu0 }
 0x1ac   :  { %v2420_v1 = vpop.f32.mrf.mxu1 }
 0x1ad   :  { %v2341_v51 = vpop.f32.mrf.mxu0 }
 0x1ae   :  { %v2342_v2 = vadd.f32 %v2341_v51, %v2340_v21  ;;  %v2421_v38 = vpop.f32.mrf.mxu1 }
 0x1af   :  { %v2422_v3 = vadd.f32 %v2421_v38, %v2420_v1 }
 0x1b0   :  { %v1457_v4 = vadd.f32 %v2342_v2, %v4204_v32 }
 0x1b2   :  { %v1602_v43 = vadd.f32 %v2422_v3, %v1457_v4 }
 0x1b4   :  { %v1664_v40 = vmax.f32 %v1602_v43, 0.0 }
 0x1b6   :  { %2526 = vmatprep.mubr.f32.mxu0 %v1664_v40 }
 0x1b8   :  { %v2423_v52 = vpop.f32.mrf.mxu1 }
 0x1b9   :  { %v2343_v17 = vpop.f32.mrf.mxu0 }
 0x1ba   :  { %v2424_v56 = vpop.f32.mrf.mxu1 }
 0x1bb   :  { %v2344_v37 = vpop.f32.mrf.mxu0  ;;  %v2425_v14 = vadd.f32 %v2424_v56, %v2423_v52 }
 0x1bc   :  { %v2345_v63 = vadd.f32 %v2344_v37, %v2343_v17  ;;  %v2426_v59 = vpop.f32.mrf.mxu1 }
 0x1bd   :  { %v2346_v44 = vpop.f32.mrf.mxu0 }
 0x1be   :  { %v1462_v11 = vadd.f32 %v2345_v63, %v4204_v32  ;;  %v2427_v18 = vpop.f32.mrf.mxu1 }
 0x1bf   :  { %v2347_v13 = vpop.f32.mrf.mxu0  ;;  %v2428_v27 = vadd.f32 %v2427_v18, %v2426_v59 }
 0x1c0   :  { %v1607_v34 = vadd.f32 %v2425_v14, %v1462_v11  ;;  %v2348_v15 = vadd.f32 %v2347_v13, %v2346_v44 }
 0x1c2   :  { %v1665_v23 = vmax.f32 %v1607_v34, 0.0  ;;  %v1467_v8 = vadd.f32 %v2348_v15, %v4204_v32 }
 0x1c4   :  { %v1612_v48 = vadd.f32 %v2428_v27, %v1467_v8  ;;  %2527 = vmatmul.mubr.f32.gmra.mxu0 %v1665_v23 }
 0x1c6   :  { %v1666_v29 = vmax.f32 %v1612_v48, 0.0 }
 0x1c8   :  { %2529 = vmatprep.mubr.f32.mxu0 %v1666_v29 }
 0x1d1   :  { %v2349_v31 = vpop.f32.mrf.mxu0 }
 0x1d2   :  { %v2429_v33 = vpop.f32.mrf.mxu1 }
 0x1d3   :  { %v2350_v62 = vpop.f32.mrf.mxu0 }
 0x1d4   :  { %v2351_v25 = vadd.f32 %v2350_v62, %v2349_v31  ;;  %v2430_v20 = vpop.f32.mrf.mxu1 }
 0x1d5   :  { %v2431_v26 = vadd.f32 %v2430_v20, %v2429_v33 }
 0x1d6   :  { %v1472_v36 = vadd.f32 %v2351_v25, %v4204_v32 }
 0x1d8   :  { %v1617_v30 = vadd.f32 %v2431_v26, %v1472_v36 }
 0x1da   :  { %v1667_v47 = vmax.f32 %v1617_v30, 0.0 }
 0x1dc   :  { %2530 = vmatmul.mubr.f32.gmra.mxu0 %v1667_v47 }
 0x1e0   :  { %v2352_v0 = vpop.f32.mrf.mxu0  ;;  %v2432_v39 = vpop.f32.mrf.mxu1 }
 0x1e2   :  { %v2353_v61 = vpop.f32.mrf.mxu0  ;;  %v2433_v7 = vpop.f32.mrf.mxu1 }
 0x1e3   :  { %v2354_v58 = vadd.f32 %v2353_v61, %v2352_v0  ;;  %v2434_v41 = vadd.f32 %v2433_v7, %v2432_v39 }
 0x1e4   :  { %v2355_v9 = vpop.f32.mrf.mxu0  ;;  %v2435_v45 = vpop.f32.mrf.mxu1 }
 0x1e5   :  { %v1477_v10 = vadd.f32 %v2354_v58, %v4204_v32 }
 0x1e6   :  { %v2356_v19 = vpop.f32.mrf.mxu0  ;;  %v2436_v5 = vpop.f32.mrf.mxu1 }
 0x1e7   :  { %v1622_v54 = vadd.f32 %v2434_v41, %v1477_v10  ;;  %v2357_v55 = vadd.f32 %v2356_v19, %v2355_v9  ;;  %v2437_v12 = vadd.f32 %v2436_v5, %v2435_v45  ;;  %v2295_v19 = vld [vmem:[%s4339_s4] ss:$0 sm:$0xff]  ;;  %s2797_s4 = smov [#allocation8]  }
 0x1e8   :  { %s2025_s10 = sshll.u32 %s2797_s4, 4  ;;  %s2026_s10 = int_to_ptr.vmem [resolvable:$true] %s2025_s10 }
 0x1e9   :  { %v1668_v42 = vmax.f32 %v1622_v54, 0.0  ;;  %v1482_v46 = vadd.f32 %v2357_v55, %v4204_v32  ;;  %s2761_s11 = scalar_lea.vmem %s2026_s10, 2048  ;;  %p2766_p2 = scmp.lt.s32.totalorder %s2026_s10, %s2026_s10 }
 0x1ea   :  { %p2762_p1 = scmp.ne.s32.totalorder %s2026_s10, %s2761_s11  ;;  %p2767_p3 = scmp.lt.s32.totalorder %s2761_s11, %s2761_s11 }
 0x1eb   :  { %v1627_v49 = vadd.f32 %v2437_v12, %v1482_v46  ;;  %2532 = vmatprep.mubr.f32.mxu1 %v1668_v42 }
 0x1ec   :  { %p2768_p4 = por %p2767_p3, %p2766_p2 }
 0x1ed   :  { %v1669_v24 = vmax.f32 %v1627_v49, 0.0 }
 0x1ee   :  { %p2769_p5 = pnand %p2768_p4, %p2762_p1 }
 0x1ef   :  { %2533 = vmatmul.mubr.f32.vlgmr.msra.gmra.mxu1 %v1669_v24 }
 0x1f9   :  { %v2358_v53 = vpop.f32.mrf.mxu0 }
 0x1fa   :  { %v2438_v28 = vpop.f32.mrf.mxu1 }
 0x1fb   :  { %v2359_v35 = vpop.f32.mrf.mxu0 }
 0x1fc   :  { %v2360_v6 = vadd.f32 %v2359_v35, %v2358_v53  ;;  %v2439_v22 = vpop.f32.mrf.mxu1 }
 0x1fd   :  { %v2440_v16 = vadd.f32 %v2439_v22, %v2438_v28 }
 0x1fe   :  { %v1487_v57 = vadd.f32 %v2360_v6, %v4204_v32 }
 0x200   :  { %v1632_v50 = vadd.f32 %v2440_v16, %v1487_v57 }
 0x202   :  { %v1670_v60 = vmax.f32 %v1632_v50, 0.0 }
 0x204   :  { %2535 = vmatprep.mubr.f32.mxu1 %v1670_v60 }
 0x208   :  { %v2361_v21 = vpop.f32.mrf.mxu0  ;;  %v2441_v1 = vpop.f32.mrf.mxu1 }
 0x20a   :  { %v2362_v51 = vpop.f32.mrf.mxu0  ;;  %v2442_v2 = vpop.f32.mrf.mxu1 }
 0x20b   :  { %v2363_v38 = vadd.f32 %v2362_v51, %v2361_v21  ;;  %v2443_v40 = vadd.f32 %v2442_v2, %v2441_v1 }
 0x20c   :  { %v2364_v4 = vpop.f32.mrf.mxu0  ;;  %v2444_v3 = vpop.f32.mrf.mxu1 }
 0x20d   :  { %v1492_v43 = vadd.f32 %v2363_v38, %v4204_v32 }
 0x20e   :  { %v2365_v17 = vpop.f32.mrf.mxu0  ;;  %v2445_v52 = vpop.f32.mrf.mxu1 }
 0x20f   :  { %v1637_v37 = vadd.f32 %v2443_v40, %v1492_v43  ;;  %v2366_v56 = vadd.f32 %v2365_v17, %v2364_v4  ;;  %v2446_v59 = vadd.f32 %v2445_v52, %v2444_v3 }
 0x211   :  { %v1671_v63 = vmax.f32 %v1637_v37, 0.0  ;;  %v1497_v44 = vadd.f32 %v2366_v56, %v4204_v32 }
 0x213   :  { %v1642_v11 = vadd.f32 %v2446_v59, %v1497_v44  ;;  %2536 = vmatmul.mubr.f32.gmra.mxu1 %v1671_v63 }
 0x215   :  { %v1672_v14 = vmax.f32 %v1642_v11, 0.0 }
 0x217   :  { %2538 = vmatprep.mubr.f32.mxu1 %v1672_v14 }
 0x221   :  { %v2367_v13 = vpop.f32.mrf.mxu0  ;;  %v2447_v18 = vpop.f32.mrf.mxu1 }
 0x223   :  { %v2368_v34 = vpop.f32.mrf.mxu0  ;;  %v2448_v23 = vpop.f32.mrf.mxu1 }
 0x224   :  { %v2369_v15 = vadd.f32 %v2368_v34, %v2367_v13  ;;  %v2449_v27 = vadd.f32 %v2448_v23, %v2447_v18 }
 0x226   :  { %v1502_v8 = vadd.f32 %v2369_v15, %v4204_v32 }
 0x228   :  { %v1647_v48 = vadd.f32 %v2449_v27, %v1502_v8 }
 0x22a   :  { %v1673_v29 = vmax.f32 %v1647_v48, 0.0 }
 0x22c   :  { %2539 = vmatmul.mubr.f32.gmra.mxu1 %v1673_v29 }
 0x230   :  { %v2370_v31 = vpop.f32.mrf.mxu0 }
 0x231   :  { %v2450_v33 = vpop.f32.mrf.mxu1 }
 0x232   :  { %v2371_v62 = vpop.f32.mrf.mxu0 }
 0x233   :  { %v2372_v25 = vadd.f32 %v2371_v62, %v2370_v31  ;;  %v2451_v20 = vpop.f32.mrf.mxu1 }
 0x234   :  { %v2373_v36 = vpop.f32.mrf.mxu0  ;;  %v2452_v30 = vadd.f32 %v2451_v20, %v2450_v33 }
 0x235   :  { %v1507_v26 = vadd.f32 %v2372_v25, %v4204_v32  ;;  %v2453_v47 = vpop.f32.mrf.mxu1 }
 0x236   :  { %v2374_v0 = vpop.f32.mrf.mxu0 }
 0x237   :  { %v1652_v39 = vadd.f32 %v2452_v30, %v1507_v26  ;;  %v2375_v61 = vadd.f32 %v2374_v0, %v2373_v36  ;;  %v2454_v58 = vpop.f32.mrf.mxu1 }
 0x238   :  { %v2455_v10 = vadd.f32 %v2454_v58, %v2453_v47 }
 0x239   :  { %v1674_v7 = vmax.f32 %v1652_v39, 0.0  ;;  %v1512_v9 = vadd.f32 %v2375_v61, %v4204_v32 }
 0x23b   :  { %v1657_v41 = vadd.f32 %v2455_v10, %v1512_v9  ;;  %2541 = vmatprep.mubr.f32.mxu1 %v1674_v7 }
 0x23d   :  { %v1675_v45 = vmax.f32 %v1657_v41, 0.0 }
 0x23f   :  { %2542 = vmatmul.mubr.f32.gmra.mxu1 %v1675_v45 }
 0x255   :  { %v2522_v54 = vpop.f32.mrf.mxu0 }
 0x256   :  { %v1771_v55 = vadd.f32 %v2522_v54, %v2295_v19 }
 0x257   :  { %v1765_v5 = vpop.f32.mrf.mxu0 }
 0x258   :  { %v1766_v42 = vadd.f32 %v2295_v19, %v1765_v5  ;;  %1846 = vmax.xlane.f32.xlu0 %v1771_v55 }
 0x25a   :  { %1844 = vmax.xlane.f32.xlu1 %v1766_v42 }
 0x26a   :  { %v2525_v46 = vpop.f32.mrf.mxu0 }
 0x26b   :  { %v1781_v12 = vadd.f32 %v2525_v46, %v2295_v19 }
 0x26c   :  { %v1775_v49 = vpop.f32.mrf.mxu0 }
 0x26d   :  { %v1776_v24 = vadd.f32 %v2295_v19, %v1775_v49  ;;  %1850 = vmax.xlane.f32.xlu1 %v1781_v12 }
 0x26f   :  { %1848 = vmax.xlane.f32.xlu0 %v1776_v24 }
 0x284   :  { %v2528_v32 = vpop.f32.mrf.mxu0 }
 0x285   :  { %v1791_v53 = vadd.f32 %v2528_v32, %v2295_v19 }
 0x286   :  { %v1785_v28 = vpop.f32.mrf.mxu0 }
 0x287   :  { %v1786_v35 = vadd.f32 %v2295_v19, %v1785_v28  ;;  %1854 = vmax.xlane.f32.xlu1 %v1791_v53 }
 0x289   :  { %1852 = vmax.xlane.f32.xlu0 %v1786_v35 }
 0x29c   :  { %v2531_v6 = vpop.f32.mrf.mxu0 }
 0x29d   :  { %v4225_v22 = vadd.f32 %v2531_v6, %v2295_v19 }
 0x29e   :  { %v1795_v57 = vpop.f32.mrf.mxu0 }
 0x29f   :  { %v4227_v16 = vadd.f32 %v2295_v19, %v1795_v57  ;;  %1858 = vmax.xlane.f32.xlu1 %v4225_v22 }
 0x2a1   :  { %1856 = vmax.xlane.f32.xlu0 %v4227_v16 }
 0x2af   :  { %v2534_v50 = vpop.f32.mrf.mxu1 }
 0x2b0   :  { %v4231_v60 = vadd.f32 %v2534_v50, %v2295_v19 }
 0x2b1   :  { %v1805_v21 = vpop.f32.mrf.mxu1 }
 0x2b2   :  { %v4233_v1 = vadd.f32 %v2295_v19, %v1805_v21  ;;  %1862 = vmax.xlane.f32.xlu1 %v4231_v60 }
 0x2b4   :  { %1860 = vmax.xlane.f32.xlu0 %v4233_v1 }
 0x2d3   :  { %v2537_v51 = vpop.f32.mrf.mxu1 }
 0x2d4   :  { %v4237_v2 = vadd.f32 %v2537_v51, %v2295_v19 }
 0x2d5   :  { %v1815_v38 = vpop.f32.mrf.mxu1 }
 0x2d6   :  { %v4239_v4 = vadd.f32 %v2295_v19, %v1815_v38  ;;  %1866 = vmax.xlane.f32.xlu1 %v4237_v2 }
 0x2d8   :  { %1864 = vmax.xlane.f32.xlu0 %v4239_v4 }
 0x2e1   :  { %v1847_v40 = vpop.xlane.xlu0 %1846 }
 0x2e2   :  { %v4248_v56 = vsub.f32 %v1771_v55, %v1847_v40 }
 0x2e3   :  { %v1845_v37 = vpop.xlane.xlu1 %1844 }
 0x2e4   :  { %v4251_v63 = vsub.f32 %v1766_v42, %v1845_v37  ;;  %v1894_v44 = vmul.f32 1.442695, %v4248_v56 }
 0x2e6   :  { %v1892_v59 = vmul.f32 1.442695, %v4251_v63  ;;  %2637 = vpow2.f32 %v1894_v44 }
 0x2e8   :  { %2639 = vpow2.f32 %v1892_v59 }
 0x2ec   :  { %v2540_v3 = vpop.f32.mrf.mxu1 }
 0x2ed   :  { %v4243_v43 = vadd.f32 %v2540_v3, %v2295_v19 }
 0x2ee   :  { %v1825_v17 = vpop.f32.mrf.mxu1 }
 0x2ef   :  { %v4245_v52 = vadd.f32 %v2295_v19, %v1825_v17  ;;  %1870 = vmax.xlane.f32.xlu1 %v4243_v43 }
 0x2f1   :  { %1868 = vmax.xlane.f32.xlu0 %v4245_v52 }
 0x2f3   :  { %v2638_v29 = vpop.eup %2637 }
 0x2f5   :  { %v2640_v31 = vpop.eup %2639 }
 0x2f6   :  { %v1851_v11 = vpop.xlane.xlu1 %1850 }
 0x2f7   :  { %v4255_v14 = vsub.f32 %v1781_v12, %v1851_v11 }
 0x2f8   :  { %v1849_v13 = vpop.xlane.xlu0 %1848 }
 0x2f9   :  { %v1898_v18 = vmul.f32 1.442695, %v4255_v14  ;;  %v4258_v34 = vsub.f32 %v1776_v24, %v1849_v13 }
 0x2fb   :  { %2641 = vpow2.f32 %v1898_v18  ;;  %v1896_v15 = vmul.f32 1.442695, %v4258_v34 }
 0x2fd   :  { %2643 = vpow2.f32 %v1896_v15 }
 0x2ff   :  { %v2543_v23 = vpop.f32.mrf.mxu1 }
 0x300   :  { %v4261_v8 = vadd.f32 %v2543_v23, %v2295_v19 }
 0x301   :  { %v1835_v27 = vpop.f32.mrf.mxu1 }
 0x302   :  { %v4263_v48 = vadd.f32 %v2295_v19, %v1835_v27  ;;  %1874 = vmax.xlane.f32.xlu1 %v4261_v8 }
 0x304   :  { %1872 = vmax.xlane.f32.xlu0 %v4263_v48 }
 0x306   :  { %1926 = vadd.xlane.f32.xlu1 %v2638_v29 }
 0x308   :  { %1924 = vadd.xlane.f32.xlu0 %v2640_v31  ;;  %v2642_v33 = vpop.eup %2641 }
 0x30a   :  { %1930 = vadd.xlane.f32.xlu1 %v2642_v33  ;;  %v2644_v62 = vpop.eup %2643 }
 0x30c   :  { %1928 = vadd.xlane.f32.xlu0 %v2644_v62 }
 0x310   :  { %v1855_v25 = vpop.xlane.xlu1 %1854 }
 0x311   :  { %v4267_v20 = vsub.f32 %v1791_v53, %v1855_v25 }
 0x312   :  { %v1853_v36 = vpop.xlane.xlu0 %1852 }
 0x313   :  { %v1902_v26 = vmul.f32 1.442695, %v4267_v20  ;;  %v4270_v30 = vsub.f32 %v1786_v35, %v1853_v36 }
 0x315   :  { %2645 = vpow2.f32 %v1902_v26  ;;  %v1900_v47 = vmul.f32 1.442695, %v4270_v30 }
 0x317   :  { %2647 = vpow2.f32 %v1900_v47 }
 0x322   :  { %v2646_v0 = vpop.eup %2645 }
 0x323   :  { %1934 = vadd.xlane.f32.xlu1 %v2646_v0 }
 0x324   :  { %v2648_v39 = vpop.eup %2647 }
 0x325   :  { %1932 = vadd.xlane.f32.xlu0 %v2648_v39 }
 0x328   :  { %v1859_v61 = vpop.xlane.xlu1 %1858 }
 0x329   :  { %v4274_v58 = vsub.f32 %v4225_v22, %v1859_v61 }
 0x32a   :  { %v1857_v7 = vpop.xlane.xlu0 %1856 }
 0x32b   :  { %v1906_v9 = vmul.f32 1.442695, %v4274_v58  ;;  %v4278_v10 = vsub.f32 %v4227_v16, %v1857_v7 }
 0x32d   :  { %2649 = vpow2.f32 %v1906_v9  ;;  %v1904_v41 = vmul.f32 1.442695, %v4278_v10 }
 0x32f   :  { %2651 = vpow2.f32 %v1904_v41 }
 0x33a   :  { %v2650_v45 = vpop.eup %2649 }
 0x33b   :  { %v1863_v19 = vpop.xlane.xlu1 %1862  ;;  %1938 = vadd.xlane.f32.xlu1 %v2650_v45 }
 0x33c   :  { %v2652_v54 = vpop.eup %2651  ;;  %v4282_v55 = vsub.f32 %v4231_v60, %v1863_v19 }
 0x33d   :  { %v1861_v5 = vpop.xlane.xlu0 %1860  ;;  %1936 = vadd.xlane.f32.xlu0 %v2652_v54 }
 0x33e   :  { %v1910_v42 = vmul.f32 1.442695, %v4282_v55  ;;  %v4286_v46 = vsub.f32 %v4233_v1, %v1861_v5 }
 0x340   :  { %2653 = vpow2.f32 %v1910_v42  ;;  %v1908_v12 = vmul.f32 1.442695, %v4286_v46 }
 0x342   :  { %2655 = vpow2.f32 %v1908_v12 }
 0x34d   :  { %v2654_v49 = vpop.eup %2653 }
 0x34e   :  { %1942 = vadd.xlane.f32.xlu1 %v2654_v49 }
 0x34f   :  { %v2656_v24 = vpop.eup %2655 }
 0x350   :  { %1940 = vadd.xlane.f32.xlu0 %v2656_v24 }
 0x35f   :  { %v1867_v32 = vpop.xlane.xlu1 %1866 }
 0x360   :  { %v4290_v53 = vsub.f32 %v4237_v2, %v1867_v32 }
 0x361   :  { %v1865_v28 = vpop.xlane.xlu0 %1864 }
 0x362   :  { %v1914_v35 = vmul.f32 1.442695, %v4290_v53  ;;  %v4294_v6 = vsub.f32 %v4239_v4, %v1865_v28 }
 0x364   :  { %2657 = vpow2.f32 %v1914_v35  ;;  %v1912_v22 = vmul.f32 1.442695, %v4294_v6 }
 0x366   :  { %2659 = vpow2.f32 %v1912_v22 }
 0x371   :  { %v2658_v57 = vpop.eup %2657 }
 0x372   :  { %1946 = vadd.xlane.f32.xlu1 %v2658_v57 }
 0x373   :  { %v2660_v16 = vpop.eup %2659 }
 0x374   :  { %1944 = vadd.xlane.f32.xlu0 %v2660_v16 }
 0x378   :  { %v1871_v50 = vpop.xlane.xlu1 %1870 }
 0x379   :  { %v4298_v60 = vsub.f32 %v4243_v43, %v1871_v50 }
 0x37a   :  { %v1869_v21 = vpop.xlane.xlu0 %1868 }
 0x37b   :  { %v1918_v1 = vmul.f32 1.442695, %v4298_v60  ;;  %v4302_v51 = vsub.f32 %v4245_v52, %v1869_v21 }
 0x37d   :  { %2661 = vpow2.f32 %v1918_v1  ;;  %v1916_v2 = vmul.f32 1.442695, %v4302_v51 }
 0x37f   :  { %2663 = vpow2.f32 %v1916_v2 }
 0x38a   :  { %v2662_v38 = vpop.eup %2661 }
 0x38b   :  { %1950 = vadd.xlane.f32.xlu1 %v2662_v38  ;;  %v1875_v3 = vpop.xlane.xlu1 %1874 }
 0x38c   :  { %v2664_v4 = vpop.eup %2663  ;;  %v4306_v40 = vsub.f32 %v4261_v8, %v1875_v3 }
 0x38d   :  { %1948 = vadd.xlane.f32.xlu0 %v2664_v4  ;;  %v1873_v43 = vpop.xlane.xlu0 %1872 }
 0x38e   :  { %v1922_v17 = vmul.f32 1.442695, %v4306_v40  ;;  %v4310_v37 = vsub.f32 %v4263_v48, %v1873_v43 }
 0x38f   :  { %v1927_v52 = vpop.xlane.xlu1 %1926 }
 0x390   :  { %2665 = vpow2.f32 %v1922_v17  ;;  %v1920_v44 = vmul.f32 1.442695, %v4310_v37 }
 0x391   :  { %2667 = vlog2.f32 %v1927_v52  ;;  %v1925_v59 = vpop.xlane.xlu0 %1924 }
 0x392   :  { %2669 = vpow2.f32 %v1920_v44 }
 0x393   :  { %2671 = vlog2.f32 %v1925_v59  ;;  %v1931_v11 = vpop.xlane.xlu1 %1930 }
 0x394   :  { %2673 = vlog2.f32 %v1931_v11 }
 0x395   :  { %v1929_v13 = vpop.xlane.xlu0 %1928 }
 0x396   :  { %2675 = vlog2.f32 %v1929_v13 }
 0x39d   :  { %v2666_v18 = vpop.eup %2665 }
 0x39e   :  { %v2668_v15 = vpop.eup %2667  ;;  %1954 = vadd.xlane.f32.xlu1 %v2666_v18 }
 0x39f   :  { %v2670_v23 = vpop.eup %2669  ;;  %v1959_v8 = vmul.f32 0.6931472, %v2668_v15 }
 0x3a0   :  { %v2672_v27 = vpop.eup %2671  ;;  %1952 = vadd.xlane.f32.xlu0 %v2670_v23 }
 0x3a1   :  { %v1989_v48 = vsub.f32 %v4248_v56, %v1959_v8  ;;  %v1957_v29 = vmul.f32 0.6931472, %v2672_v27  ;;  %v2674_v31 = vpop.eup %2673 }
 0x3a2   :  { %v1963_v62 = vmul.f32 0.6931472, %v2674_v31 }
 0x3a3   :  { %2005 = vst [vmem:[#allocation8 + $0x8] sm:$0xff] %v1989_v48  ;;  %v1988_v33 = vsub.f32 %v4251_v63, %v1957_v29  ;;  %v2676_v25 = vpop.eup %2675 }
 0x3a4   :  { %v1991_v36 = vsub.f32 %v4255_v14, %v1963_v62  ;;  %v1961_v26 = vmul.f32 0.6931472, %v2676_v25 }
 0x3a5   :  { %2004 = vst [vmem:[#allocation8] sm:$0xff] %v1988_v33 }
 0x3a6   :  { %2007 = vst [vmem:[#allocation8 + $0x18] sm:$0xff] %v1991_v36  ;;  %v1990_v47 = vsub.f32 %v4258_v34, %v1961_v26 }
 0x3a8   :  { %2006 = vst [vmem:[#allocation8 + $0x10] sm:$0xff] %v1990_v47 }
 0x3ac   :  { %v1935_v0 = vpop.xlane.xlu1 %1934 }
 0x3ad   :  { %2677 = vlog2.f32 %v1935_v0 }
 0x3ae   :  { %v1933_v39 = vpop.xlane.xlu0 %1932 }
 0x3af   :  { %2679 = vlog2.f32 %v1933_v39 }
 0x3ba   :  { %v2678_v56 = vpop.eup %2677 }
 0x3bb   :  { %v1967_v61 = vmul.f32 0.6931472, %v2678_v56 }
 0x3bc   :  { %v2680_v7 = vpop.eup %2679 }
 0x3bd   :  { %v1993_v9 = vsub.f32 %v4267_v20, %v1967_v61  ;;  %v1965_v63 = vmul.f32 0.6931472, %v2680_v7 }
 0x3bf   :  { %2009 = vst [vmem:[#allocation8 + $0x28] sm:$0xff] %v1993_v9  ;;  %v1992_v41 = vsub.f32 %v4270_v30, %v1965_v63 }
 0x3c1   :  { %2008 = vst [vmem:[#allocation8 + $0x20] sm:$0xff] %v1992_v41 }
 0x3c4   :  { %v1939_v14 = vpop.xlane.xlu1 %1938 }
 0x3c5   :  { %2681 = vlog2.f32 %v1939_v14 }
 0x3c6   :  { %v1937_v45 = vpop.xlane.xlu0 %1936 }
 0x3c7   :  { %2683 = vlog2.f32 %v1937_v45 }
 0x3d2   :  { %v2682_v34 = vpop.eup %2681 }
 0x3d3   :  { %v1971_v19 = vmul.f32 0.6931472, %v2682_v34 }
 0x3d4   :  { %v2684_v54 = vpop.eup %2683 }
 0x3d5   :  { %v1995_v5 = vsub.f32 %v4274_v58, %v1971_v19  ;;  %v1969_v42 = vmul.f32 0.6931472, %v2684_v54 }
 0x3d7   :  { %2011 = vst [vmem:[#allocation8 + $0x38] sm:$0xff] %v1995_v5  ;;  %v1994_v12 = vsub.f32 %v4278_v10, %v1969_v42  ;;  %v1943_v49 = vpop.xlane.xlu1 %1942 }
 0x3d8   :  { %2685 = vlog2.f32 %v1943_v49 }
 0x3d9   :  { %2010 = vst [vmem:[#allocation8 + $0x30] sm:$0xff] %v1994_v12  ;;  %v1941_v20 = vpop.xlane.xlu0 %1940 }
 0x3da   :  { %2687 = vlog2.f32 %v1941_v20 }
 0x3e5   :  { %v2686_v30 = vpop.eup %2685 }
 0x3e6   :  { %v1975_v24 = vmul.f32 0.6931472, %v2686_v30 }
 0x3e7   :  { %v2688_v32 = vpop.eup %2687 }
 0x3e8   :  { %v1997_v28 = vsub.f32 %v4282_v55, %v1975_v24  ;;  %v1973_v35 = vmul.f32 0.6931472, %v2688_v32 }
 0x3ea   :  { %2013 = vst [vmem:[#allocation8 + $0x48] sm:$0xff] %v1997_v28  ;;  %v1996_v22 = vsub.f32 %v4286_v46, %v1973_v35 }
 0x3ec   :  { %2012 = vst [vmem:[#allocation8 + $0x40] sm:$0xff] %v1996_v22 }
 0x3fb   :  { %v1947_v58 = vpop.xlane.xlu1 %1946 }
 0x3fc   :  { %2689 = vlog2.f32 %v1947_v58 }
 0x3fd   :  { %v1945_v57 = vpop.xlane.xlu0 %1944 }
 0x3fe   :  { %2691 = vlog2.f32 %v1945_v57 }
 0x409   :  { %v2690_v10 = vpop.eup %2689 }
 0x40a   :  { %v1979_v16 = vmul.f32 0.6931472, %v2690_v10 }
 0x40b   :  { %v2692_v50 = vpop.eup %2691 }
 0x40c   :  { %v1999_v21 = vsub.f32 %v4290_v53, %v1979_v16  ;;  %v1977_v1 = vmul.f32 0.6931472, %v2692_v50 }
 0x40e   :  { %2015 = vst [vmem:[#allocation8 + $0x58] sm:$0xff] %v1999_v21  ;;  %v1998_v2 = vsub.f32 %v4294_v6, %v1977_v1 }
 0x410   :  { %2014 = vst [vmem:[#allocation8 + $0x50] sm:$0xff] %v1998_v2 }
 0x414   :  { %v1951_v55 = vpop.xlane.xlu1 %1950 }
 0x415   :  { %2693 = vlog2.f32 %v1951_v55 }
 0x416   :  { %v1949_v38 = vpop.xlane.xlu0 %1948 }
 0x417   :  { %2695 = vlog2.f32 %v1949_v38 }
 0x422   :  { %v2694_v46 = vpop.eup %2693 }
 0x423   :  { %v1983_v4 = vmul.f32 0.6931472, %v2694_v46 }
 0x424   :  { %v2696_v3 = vpop.eup %2695 }
 0x425   :  { %v2001_v43 = vsub.f32 %v4298_v60, %v1983_v4  ;;  %v1981_v17 = vmul.f32 0.6931472, %v2696_v3 }
 0x427   :  { %2017 = vst [vmem:[#allocation8 + $0x68] sm:$0xff] %v2001_v43  ;;  %v2000_v52 = vsub.f32 %v4302_v51, %v1981_v17  ;;  %v1955_v44 = vpop.xlane.xlu1 %1954 }
 0x428   :  { %2697 = vlog2.f32 %v1955_v44 }
 0x429   :  { %2016 = vst [vmem:[#allocation8 + $0x60] sm:$0xff] %v2000_v52  ;;  %v1953_v53 = vpop.xlane.xlu0 %1952 }
 0x42a   :  { %2699 = vlog2.f32 %v1953_v53 }
 0x435   :  { %v2698_v6 = vpop.eup %2697 }
 0x436   :  { %v1987_v59 = vmul.f32 0.6931472, %v2698_v6 }
 0x437   :  { %v2700_v11 = vpop.eup %2699 }
 0x438   :  { %v2003_v13 = vsub.f32 %v4306_v40, %v1987_v59  ;;  %v1985_v18 = vmul.f32 0.6931472, %v2700_v11 }
 0x43a   :  { %2019 = vst [vmem:[#allocation8 + $0x78] sm:$0xff] %v2003_v13  ;;  %v2002_v60 = vsub.f32 %v4310_v37, %v1985_v18 }
 0x43c   :  { %2018 = vst [vmem:[#allocation8 + $0x70] sm:$0xff] %v2002_v60 }
 0x43d   :  { %2772 = shalt.err (!%p2769_p5)
}
 0x43e   :  { %2031 = dma.vmem_to_hbm [thread:$0]  %s2026_s10, 2048, %s4340_s5, [#allocation4], %s2789_s23, %s2789_s23, %s2790_s24  }
 0x43f   :  { %2785 = dma.done.wait [#allocation4], 2048  }
 0x440   :  { %2786 = vsyncadd [#allocation4], 4294965248 }
 0x441   :  { %2035 = vsyncpa [#allocation3], 1 }
 0x442   :  { %2036 = vsyncpa [#allocation6], 1 }
 0x443   :  { %2037 = vsyncpa [#allocation4], 1 }

</bundles_post_ra>
